<compile_context>
chip_gen: v7x
topology: tpu7x:2x2x1
jax: 0.10.0
libtpu: 0.0.40
codegen_flags: <defaults>
</compile_context>

<pallas_src>
import jax
import jax.numpy as jnp
from jax.experimental import pallas as pl
from jax.experimental.pallas import tpu as pltpu

HIGH = jax.lax.Precision.HIGHEST


def _with_attention_kernel(
    inputs_ref,      # [tb, E]          decoder step input embedding
    states_ref,      # [tb, H]          previous decoder hidden state
    encoded_ref,     # [tb, S, H]       encoder memory
    enc_proj_ref,    # [tb, S, A]       cached encoder projection (setup_memory)
    w_state_ref,     # [H, A+3H]  bf16  (project_decoder | GRU W_hh r|z|n) lane-packed
    b_state_ref,     # [1, A+3H]  f32   (b_dec | b_hh)
    w_out_ref,       # [1, A]     f32   output_layer (A -> 1)
    b_out_ref,       # [1, 1]     f32
    w_ih_x_ref,      # [E, 3H]    bf16  GRU W_ih (inputs part), gates r|z|n on lanes
    w_ih_a_ref,      # [H, 3H]    bf16  GRU W_ih (attention part)
    b_ih_ref,        # [1, 3H]    f32
    new_state_ref,   # [tb, H]    output
):
    H = states_ref.shape[-1]
    A = w_out_ref.shape[-1]

    states_f32 = states_ref[...].astype(jnp.float32)
    states_bf = states_f32.astype(jnp.bfloat16)
    inputs_bf = inputs_ref[...].astype(jnp.bfloat16)

    # ---- one wide matmul against the previous hidden state -----------------
    # lanes [0, A)      -> attention decoder projection
    # lanes [A, A+3H)   -> GRU hidden-to-hidden pre-activations (r | z | n)
    state_proj = (jnp.dot(states_bf, w_state_ref[...],
                          preferred_element_type=jnp.float32)
                  + b_state_ref[...])                                           # [tb, A+3H]
    dec_proj = state_proj[:, :A]                                                # [tb, A]
    gh = state_proj[:, A:]                                                      # [tb, 3H]

    # ---------------- Bahdanau attention ----------------
    energy = jnp.tanh(enc_proj_ref[...].astype(jnp.float32)
                      + dec_proj[:, None, :])                                   # [tb, S, A]

    # scores = Linear(A -> 1)(energy): weighted lane reduction (VPU mul + XLU).
    scores = (jnp.sum(energy * w_out_ref[...][None, :, :], axis=-1)
              + b_out_ref[...])                                                 # [tb, S]

    # softmax over the sequence axis (torch dim=1)
    scores = scores - jnp.max(scores, axis=-1, keepdims=True)
    exp_s = jnp.exp(scores)
    inv_denom = pl.reciprocal(jnp.sum(exp_s, axis=-1, keepdims=True), approx=True)
    weights = exp_s * inv_denom                                                 # [tb, S]

    # attention = sum_s weights * encoded (element-wise promote, sublane reduce)
    attention = jnp.sum(weights[:, :, None] * encoded_ref[...], axis=1)         # [tb, H] f32
    attention_bf = attention.astype(jnp.bfloat16)

    # ---------------- GRU cell on concat([inputs, attention]) ----------------
    # cat([inputs, attention]) @ W_ih == inputs @ W_ih[:E] + attention @ W_ih[E:]
    gx = (jnp.dot(inputs_bf, w_ih_x_ref[...], preferred_element_type=jnp.float32)
          + jnp.dot(attention_bf, w_ih_a_ref[...], preferred_element_type=jnp.float32)
          + b_ih_ref[...])                                                      # [tb, 3H]

    r = jax.nn.sigmoid(gx[:, 0 * H:1 * H] + gh[:, 0 * H:1 * H])
    z = jax.nn.sigmoid(gx[:, 1 * H:2 * H] + gh[:, 1 * H:2 * H])
    n = jnp.tanh(gx[:, 2 * H:3 * H] + r * gh[:, 2 * H:3 * H])
    h_new = (1.0 - z) * n + z * states_f32                                      # [tb, H]

    new_state_ref[...] = h_new.astype(new_state_ref.dtype)


def with_attention_forward(inputs, states, encoded, encoded_projected, kp, *, tb=8):
    """One decoder step.  `encoded_projected` is the setup_memory cache."""
    B, _ = inputs.shape
    H = states.shape[-1]
    assert B % tb == 0, "batch must be divisible by the batch tile"

    batched = (inputs, states, encoded, encoded_projected)
    weights = (kp["w_state"], kp["b_state"], kp["w_out"], kp["b_out"],
               kp["w_ih_x"], kp["w_ih_a"], kp["b_ih"])

    def batch_spec(x):
        nd = x.ndim
        return pl.BlockSpec((tb,) + tuple(x.shape[1:]),
                            lambda i, nd=nd: (i,) + (0,) * (nd - 1))

    def const_spec(x):
        nd = x.ndim
        # Constant block index -> weight tile is not re-fetched between grid
        # steps (stays VMEM-resident across the batch grid).
        return pl.BlockSpec(tuple(x.shape), lambda i, nd=nd: (0,) * nd)

    in_specs = [batch_spec(x) for x in batched] + [const_spec(w) for w in weights]

    return pl.pallas_call(
        _with_attention_kernel,
        out_shape=jax.ShapeDtypeStruct((B, H), states.dtype),
        grid_spec=pltpu.PrefetchScalarGridSpec(
            num_scalar_prefetch=0,
            grid=(B // tb,),
            in_specs=in_specs,
            out_specs=pl.BlockSpec((tb, H), lambda i: (i, 0)),
        ),
        compiler_params=pltpu.CompilerParams(
            dimension_semantics=("parallel",)),
    )(*batched, *weights)


# ----------------------------- parameters ---------------------------------

def init_params(key, E, H, A):
    """Canonical (torch-like) f32 params; gate-stacked [3, ., H] for the GRU."""
    ks = jax.random.split(key, 10)

    def u(k, fan_in, shape):
        bound = 1.0 / (fan_in ** 0.5)
        return jax.random.uniform(k, shape, jnp.float32, -bound, bound)

    return dict(
        w_enc=u(ks[0], H, (H, A)), b_enc=u(ks[1], H, (1, A)),
        w_dec=u(ks[2], H, (H, A)), b_dec=u(ks[3], H, (1, A)),
        w_out=u(ks[4], A, (1, A)), b_out=u(ks[5], A, (1, 1)),
        w_ih=u(ks[6], H, (3, E + H, H)),    # GRUCell weight_ih (transposed, r/z/n)
        b_ih=u(ks[7], H, (3, 1, H)),
        w_hh=u(ks[8], H, (3, H, H)),
        b_hh=u(ks[9], H, (3, 1, H)),
    )


def pack_params_for_kernel(p, E):
    """Lane-pack GRU gates to [., 3H]; fuse w_dec|w_hh; bf16 matmul weights."""
    w_ih_packed = jnp.concatenate([p["w_ih"][0], p["w_ih"][1], p["w_ih"][2]], axis=1)   # [E+H, 3H]
    w_hh_packed = jnp.concatenate([p["w_hh"][0], p["w_hh"][1], p["w_hh"][2]], axis=1)   # [H, 3H]
    b_hh_packed = jnp.concatenate([p["b_hh"][0], p["b_hh"][1], p["b_hh"][2]], axis=-1)  # [1, 3H]
    return dict(
        w_state=jnp.concatenate([p["w_dec"], w_hh_packed],
                                axis=1).astype(jnp.bfloat16),                           # [H, A+3H]
        b_state=jnp.concatenate([p["b_dec"], b_hh_packed], axis=-1),                    # [1, A+3H]
        w_out=p["w_out"],                                                               # [1, A]
        b_out=p["b_out"],                                                               # [1, 1]
        w_ih_x=w_ih_packed[:E].astype(jnp.bfloat16),                                    # [E, 3H]
        w_ih_a=w_ih_packed[E:].astype(jnp.bfloat16),                                    # [H, 3H]
        b_ih=jnp.concatenate([p["b_ih"][0], p["b_ih"][1], p["b_ih"][2]], axis=-1),      # [1, 3H]
    )


def setup_memory(encoded, p):
    """PyTorch setup_memory(): cache the encoder projection once per sequence."""
    return (jnp.einsum('bsh,ha->bsa', encoded, p["w_enc"], precision=HIGH)
            + p["b_enc"])


# ----------------------------- pure-JAX reference --------------------------

def reference_forward(inputs, states, encoded, encoded_projected, p):
    """Mirrors the PyTorch forward exactly (f32, HIGHEST precision)."""
    dec_proj = jnp.einsum('bh,ha->ba', states, p["w_dec"], precision=HIGH) + p["b_dec"]
    energy = jnp.tanh(encoded_projected + dec_proj[:, None, :])
    scores = jnp.einsum('bsa,a->bs', energy, p["w_out"][0], precision=HIGH) + p["b_out"][0, 0]
    weights = jax.nn.softmax(scores, axis=1)
    attention = jnp.einsum('bs,bsh->bh', weights, encoded, precision=HIGH)
    cell_input = jnp.concatenate([inputs, attention], axis=1)
    gx = jnp.einsum('bi,gih->gbh', cell_input, p["w_ih"], precision=HIGH) + p["b_ih"]
    gh = jnp.einsum('bh,ghk->gbk', states, p["w_hh"], precision=HIGH) + p["b_hh"]
    r = jax.nn.sigmoid(gx[0] + gh[0])
    z = jax.nn.sigmoid(gx[1] + gh[1])
    n = jnp.tanh(gx[2] + r * gh[2])
    return (1.0 - z) * n + z * states


if __name__ == "__main__":
    # Small but TPU-friendly shapes: B multiple of 8, H/A multiples of 128
    # (full-lane output store, 128-aligned gate/projection lane slices).
    B, S, E, H, A = 16, 8, 32, 128, 128
    TB = 8

    key = jax.random.PRNGKey(0)
    k_in, k_st, k_enc, k_p = jax.random.split(key, 4)
    inputs = jax.random.normal(k_in, (B, E), jnp.float32)       # decoder step inputs
    states = jax.random.normal(k_st, (B, H), jnp.float32)       # previous hidden state
    encoded = jax.random.normal(k_enc, (B, S, H), jnp.float32)  # encoder memory
    params = init_params(k_p, E, H, A)

    encoded_projected = setup_memory(encoded, params)           # cached across decode steps
    kparams = pack_params_for_kernel(params, E)

    out = with_attention_forward(inputs, states, encoded, encoded_projected,
                                 kparams, tb=TB)
    out = jax.block_until_ready(out)

    ref = reference_forward(inputs, states, encoded, encoded_projected, params)
    assert out.shape == (B, H)
    err = float(jnp.max(jnp.abs(out - ref)))
    # bf16 MXU matmuls (f32 accumulation) + approx reciprocal => relaxed tolerance.
    assert err < 5e-2, f"max abs err = {err}"
    print("KERNEL_OK")
</pallas_src>

<mosaic_0001>
module attributes {stable_mosaic.version = 11 : i64} {
  func.func @_with_attention_kernel(%arg0: i32, %arg1: memref<8x32xf32, #tpu.memory_space<vmem>>, %arg2: memref<8x128xf32, #tpu.memory_space<vmem>>, %arg3: memref<8x8x128xf32, #tpu.memory_space<vmem>>, %arg4: memref<8x8x128xf32, #tpu.memory_space<vmem>>, %arg5: memref<128x512xbf16, #tpu.memory_space<vmem>>, %arg6: memref<1x512xf32, #tpu.memory_space<vmem>>, %arg7: memref<1x128xf32, #tpu.memory_space<vmem>>, %arg8: memref<1x1xf32, #tpu.memory_space<vmem>>, %arg9: memref<32x384xbf16, #tpu.memory_space<vmem>>, %arg10: memref<128x384xbf16, #tpu.memory_space<vmem>>, %arg11: memref<1x384xf32, #tpu.memory_space<vmem>>, %arg12: memref<8x128xf32, #tpu.memory_space<vmem>>) attributes {dimension_semantics = [#tpu.dimension_semantics<parallel>], iteration_bounds = array<i64: 2>, scalar_prefetch = 0 : i64, scratch_operands = 0 : i64, tpu.core_type = #tpu.core_type<tc>, window_params = [{transform_indices = @transform_0, window_bounds = array<i64: 8, 32>}, {transform_indices = @transform_1, window_bounds = array<i64: 8, 128>}, {transform_indices = @transform_2, window_bounds = array<i64: 8, 8, 128>}, {transform_indices = @transform_3, window_bounds = array<i64: 8, 8, 128>}, {pipeline_mode = #tpu.pipeline_mode<synchronous>, transform_indices = @transform_4, window_bounds = array<i64: 128, 512>}, {pipeline_mode = #tpu.pipeline_mode<synchronous>, transform_indices = @transform_5, window_bounds = array<i64: 1, 512>}, {pipeline_mode = #tpu.pipeline_mode<synchronous>, transform_indices = @transform_6, window_bounds = array<i64: 1, 128>}, {pipeline_mode = #tpu.pipeline_mode<synchronous>, transform_indices = @transform_7, window_bounds = array<i64: 1, 1>}, {pipeline_mode = #tpu.pipeline_mode<synchronous>, transform_indices = @transform_8, window_bounds = array<i64: 32, 384>}, {pipeline_mode = #tpu.pipeline_mode<synchronous>, transform_indices = @transform_9, window_bounds = array<i64: 128, 384>}, {pipeline_mode = #tpu.pipeline_mode<synchronous>, transform_indices = @transform_10, window_bounds = array<i64: 1, 384>}, {transform_indices = @transform_11, window_bounds = array<i64: 8, 128>}]} {
    %c0 = arith.constant 0 : index
    %c0_0 = arith.constant 0 : index
    %0 = vector.load %arg2[%c0, %c0_0] : memref<8x128xf32, #tpu.memory_space<vmem>>, vector<8x128xf32>
    %1 = arith.truncf %0 : vector<8x128xf32> to vector<8x128xbf16>
    %c0_1 = arith.constant 0 : index
    %c0_2 = arith.constant 0 : index
    %2 = vector.load %arg1[%c0_1, %c0_2] : memref<8x32xf32, #tpu.memory_space<vmem>>, vector<8x32xf32>
    %3 = arith.truncf %2 : vector<8x32xf32> to vector<8x32xbf16>
    %c0_3 = arith.constant 0 : index
    %c0_4 = arith.constant 0 : index
    %4 = vector.load %arg5[%c0_3, %c0_4] : memref<128x512xbf16, #tpu.memory_space<vmem>>, vector<128x512xbf16>
    %cst = arith.constant dense<0.000000e+00> : vector<8x512xf32>
    %5 = tpu.matmul %1, %4, %cst {dimension_numbers = #tpu.dot_dimension_numbers<[1], [0], [0], [1], [0, 0, 1, 1], [], []>} : vector<8x128xbf16>, vector<128x512xbf16>, vector<8x512xf32> -> vector<8x512xf32>
    %c0_5 = arith.constant 0 : index
    %c0_6 = arith.constant 0 : index
    %6 = vector.load %arg6[%c0_5, %c0_6] : memref<1x512xf32, #tpu.memory_space<vmem>>, vector<1x512xf32>
    %7 = vector.broadcast %6 : vector<1x512xf32> to vector<8x512xf32>
    %8 = arith.addf %5, %7 : vector<8x512xf32>
    %9 = vector.extract_strided_slice %8 {offsets = [0, 0], sizes = [8, 128], strides = [1, 1]} : vector<8x512xf32> to vector<8x128xf32>
    %10 = vector.extract_strided_slice %8 {offsets = [0, 128], sizes = [8, 384], strides = [1, 1]} : vector<8x512xf32> to vector<8x384xf32>
    %c0_7 = arith.constant 0 : index
    %c0_8 = arith.constant 0 : index
    %c0_9 = arith.constant 0 : index
    %11 = vector.load %arg4[%c0_7, %c0_8, %c0_9] : memref<8x8x128xf32, #tpu.memory_space<vmem>>, vector<8x8x128xf32>
    %12 = vector.shape_cast %9 : vector<8x128xf32> to vector<8x1x128xf32>
    %13 = vector.broadcast %12 : vector<8x1x128xf32> to vector<8x8x128xf32>
    %14 = arith.addf %11, %13 : vector<8x8x128xf32>
    %15 = math.tanh %14 : vector<8x8x128xf32>
    %c0_10 = arith.constant 0 : index
    %c0_11 = arith.constant 0 : index
    %16 = vector.load %arg7[%c0_10, %c0_11] : memref<1x128xf32, #tpu.memory_space<vmem>>, vector<1x128xf32>
    %17 = vector.shape_cast %16 : vector<1x128xf32> to vector<1x1x128xf32>
    %18 = vector.broadcast %17 : vector<1x1x128xf32> to vector<8x8x128xf32>
    %19 = arith.mulf %15, %18 : vector<8x8x128xf32>
    %cst_12 = arith.constant dense<0.000000e+00> : vector<8x8xf32>
    %20 = vector.multi_reduction <add>, %19, %cst_12 [2] : vector<8x8x128xf32> to vector<8x8xf32>
    %c0_13 = arith.constant 0 : index
    %c0_14 = arith.constant 0 : index
    %21 = vector.load %arg8[%c0_13, %c0_14] : memref<1x1xf32, #tpu.memory_space<vmem>>, vector<1x1xf32>
    %22 = vector.broadcast %21 : vector<1x1xf32> to vector<8x8xf32>
    %23 = arith.addf %20, %22 : vector<8x8xf32>
    %cst_15 = arith.constant dense<0xFF800000> : vector<8xf32>
    %24 = vector.multi_reduction <maximumf>, %23, %cst_15 [1] : vector<8x8xf32> to vector<8xf32>
    %25 = vector.shape_cast %24 : vector<8xf32> to vector<8x1xf32>
    %26 = vector.broadcast %25 : vector<8x1xf32> to vector<8x8xf32>
    %27 = arith.subf %23, %26 : vector<8x8xf32>
    %28 = math.exp %27 : vector<8x8xf32>
    %cst_16 = arith.constant dense<0.000000e+00> : vector<8xf32>
    %29 = vector.multi_reduction <add>, %28, %cst_16 [1] : vector<8x8xf32> to vector<8xf32>
    %30 = vector.shape_cast %29 : vector<8xf32> to vector<8x1xf32>
    %31 = tpu.reciprocal %30 {approx = true} : vector<8x1xf32> -> vector<8x1xf32>
    %32 = vector.broadcast %31 : vector<8x1xf32> to vector<8x8xf32>
    %33 = arith.mulf %28, %32 : vector<8x8xf32>
    %34 = vector.shape_cast %33 : vector<8x8xf32> to vector<8x8x1xf32>
    %c0_17 = arith.constant 0 : index
    %c0_18 = arith.constant 0 : index
    %c0_19 = arith.constant 0 : index
    %35 = vector.load %arg3[%c0_17, %c0_18, %c0_19] : memref<8x8x128xf32, #tpu.memory_space<vmem>>, vector<8x8x128xf32>
    %36 = vector.broadcast %34 : vector<8x8x1xf32> to vector<8x8x128xf32>
    %37 = arith.mulf %36, %35 : vector<8x8x128xf32>
    %cst_20 = arith.constant dense<0.000000e+00> : vector<8x128xf32>
    %38 = vector.multi_reduction <add>, %37, %cst_20 [1] : vector<8x8x128xf32> to vector<8x128xf32>
    %39 = arith.truncf %38 : vector<8x128xf32> to vector<8x128xbf16>
    %c0_21 = arith.constant 0 : index
    %c0_22 = arith.constant 0 : index
    %40 = vector.load %arg9[%c0_21, %c0_22] : memref<32x384xbf16, #tpu.memory_space<vmem>>, vector<32x384xbf16>
    %cst_23 = arith.constant dense<0.000000e+00> : vector<8x384xf32>
    %41 = tpu.matmul %3, %40, %cst_23 {dimension_numbers = #tpu.dot_dimension_numbers<[1], [0], [0], [1], [0, 0, 1, 1], [], []>} : vector<8x32xbf16>, vector<32x384xbf16>, vector<8x384xf32> -> vector<8x384xf32>
    %c0_24 = arith.constant 0 : index
    %c0_25 = arith.constant 0 : index
    %42 = vector.load %arg10[%c0_24, %c0_25] : memref<128x384xbf16, #tpu.memory_space<vmem>>, vector<128x384xbf16>
    %cst_26 = arith.constant dense<0.000000e+00> : vector<8x384xf32>
    %43 = tpu.matmul %39, %42, %cst_26 {dimension_numbers = #tpu.dot_dimension_numbers<[1], [0], [0], [1], [0, 0, 1, 1], [], []>} : vector<8x128xbf16>, vector<128x384xbf16>, vector<8x384xf32> -> vector<8x384xf32>
    %44 = arith.addf %41, %43 : vector<8x384xf32>
    %c0_27 = arith.constant 0 : index
    %c0_28 = arith.constant 0 : index
    %45 = vector.load %arg11[%c0_27, %c0_28] : memref<1x384xf32, #tpu.memory_space<vmem>>, vector<1x384xf32>
    %46 = vector.broadcast %45 : vector<1x384xf32> to vector<8x384xf32>
    %47 = arith.addf %44, %46 : vector<8x384xf32>
    %48 = vector.extract_strided_slice %47 {offsets = [0, 0], sizes = [8, 128], strides = [1, 1]} : vector<8x384xf32> to vector<8x128xf32>
    %49 = vector.extract_strided_slice %10 {offsets = [0, 0], sizes = [8, 128], strides = [1, 1]} : vector<8x384xf32> to vector<8x128xf32>
    %50 = arith.addf %48, %49 : vector<8x128xf32>
    %51 = arith.negf %50 : vector<8x128xf32>
    %52 = math.exp %51 : vector<8x128xf32>
    %cst_29 = arith.constant 1.000000e+00 : f32
    %53 = vector.broadcast %cst_29 : f32 to vector<8x128xf32>
    %54 = arith.addf %53, %52 : vector<8x128xf32>
    %55 = arith.divf %53, %54 : vector<8x128xf32>
    %56 = vector.extract_strided_slice %47 {offsets = [0, 128], sizes = [8, 128], strides = [1, 1]} : vector<8x384xf32> to vector<8x128xf32>
    %57 = vector.extract_strided_slice %10 {offsets = [0, 128], sizes = [8, 128], strides = [1, 1]} : vector<8x384xf32> to vector<8x128xf32>
    %58 = arith.addf %56, %57 : vector<8x128xf32>
    %59 = arith.negf %58 : vector<8x128xf32>
    %60 = math.exp %59 : vector<8x128xf32>
    %cst_30 = arith.constant 1.000000e+00 : f32
    %61 = vector.broadcast %cst_30 : f32 to vector<8x128xf32>
    %62 = arith.addf %61, %60 : vector<8x128xf32>
    %63 = arith.divf %61, %62 : vector<8x128xf32>
    %64 = vector.extract_strided_slice %47 {offsets = [0, 256], sizes = [8, 128], strides = [1, 1]} : vector<8x384xf32> to vector<8x128xf32>
    %65 = vector.extract_strided_slice %10 {offsets = [0, 256], sizes = [8, 128], strides = [1, 1]} : vector<8x384xf32> to vector<8x128xf32>
    %66 = arith.mulf %55, %65 : vector<8x128xf32>
    %67 = arith.addf %64, %66 : vector<8x128xf32>
    %68 = math.tanh %67 : vector<8x128xf32>
    %cst_31 = arith.constant 1.000000e+00 : f32
    %69 = vector.broadcast %cst_31 : f32 to vector<8x128xf32>
    %70 = arith.subf %69, %63 : vector<8x128xf32>
    %71 = arith.mulf %70, %68 : vector<8x128xf32>
    %72 = arith.mulf %63, %0 : vector<8x128xf32>
    %73 = arith.addf %71, %72 : vector<8x128xf32>
    %c0_32 = arith.constant 0 : index
    %c0_33 = arith.constant 0 : index
    %74 = vector.load %arg12[%c0_32, %c0_33] : memref<8x128xf32, #tpu.memory_space<vmem>>, vector<8x128xf32>
    tpu.vector_store %arg12[%c0_32, %c0_33], %73 {strides = array<i32>} : memref<8x128xf32, #tpu.memory_space<vmem>>, vector<8x128xf32>,
    return
  }
  func.func @transform_0(%arg0: i32) -> (i32, i32) {
    %c0_i32 = arith.constant 0 : i32
    %c0_i32_0 = arith.constant 0 : i32
    return %arg0, %c0_i32 : i32, i32
  }
  func.func @transform_1(%arg0: i32) -> (i32, i32) {
    %c0_i32 = arith.constant 0 : i32
    %c0_i32_0 = arith.constant 0 : i32
    return %arg0, %c0_i32 : i32, i32
  }
  func.func @transform_2(%arg0: i32) -> (i32, i32, i32) {
    %c0_i32 = arith.constant 0 : i32
    %c0_i32_0 = arith.constant 0 : i32
    %c0_i32_1 = arith.constant 0 : i32
    return %arg0, %c0_i32, %c0_i32_0 : i32, i32, i32
  }
  func.func @transform_3(%arg0: i32) -> (i32, i32, i32) {
    %c0_i32 = arith.constant 0 : i32
    %c0_i32_0 = arith.constant 0 : i32
    %c0_i32_1 = arith.constant 0 : i32
    return %arg0, %c0_i32, %c0_i32_0 : i32, i32, i32
  }
  func.func @transform_4(%arg0: i32) -> (i32, i32) {
    %c0_i32 = arith.constant 0 : i32
    %c0_i32_0 = arith.constant 0 : i32
    %c0_i32_1 = arith.constant 0 : i32
    return %c0_i32, %c0_i32_0 : i32, i32
  }
  func.func @transform_5(%arg0: i32) -> (i32, i32) {
    %c0_i32 = arith.constant 0 : i32
    %c0_i32_0 = arith.constant 0 : i32
    %c0_i32_1 = arith.constant 0 : i32
    return %c0_i32, %c0_i32_0 : i32, i32
  }
  func.func @transform_6(%arg0: i32) -> (i32, i32) {
    %c0_i32 = arith.constant 0 : i32
    %c0_i32_0 = arith.constant 0 : i32
    %c0_i32_1 = arith.constant 0 : i32
    return %c0_i32, %c0_i32_0 : i32, i32
  }
  func.func @transform_7(%arg0: i32) -> (i32, i32) {
    %c0_i32 = arith.constant 0 : i32
    %c0_i32_0 = arith.constant 0 : i32
    %c0_i32_1 = arith.constant 0 : i32
    return %c0_i32, %c0_i32_0 : i32, i32
  }
  func.func @transform_8(%arg0: i32) -> (i32, i32) {
    %c0_i32 = arith.constant 0 : i32
    %c0_i32_0 = arith.constant 0 : i32
    %c0_i32_1 = arith.constant 0 : i32
    return %c0_i32, %c0_i32_0 : i32, i32
  }
  func.func @transform_9(%arg0: i32) -> (i32, i32) {
    %c0_i32 = arith.constant 0 : i32
    %c0_i32_0 = arith.constant 0 : i32
    %c0_i32_1 = arith.constant 0 : i32
    return %c0_i32, %c0_i32_0 : i32, i32
  }
  func.func @transform_10(%arg0: i32) -> (i32, i32) {
    %c0_i32 = arith.constant 0 : i32
    %c0_i32_0 = arith.constant 0 : i32
    %c0_i32_1 = arith.constant 0 : i32
    return %c0_i32, %c0_i32_0 : i32, i32
  }
  func.func @transform_11(%arg0: i32) -> (i32, i32) {
    %c0_i32 = arith.constant 0 : i32
    %c0_i32_0 = arith.constant 0 : i32
    return %arg0, %c0_i32 : i32, i32
  }
}

</mosaic_0001>

<bundles_post_ra>
// kernel: tpu_custom_call.1
= control target key start
LH: loop header
LB: loop body
LE: loop exit
PB: predicated region body
PF: predicated region fallthrough
CT: control target
= control target key end

     0   :  { %s3358_s0 = inlined_call_operand.hbm [shape: f32[16,32], index: 0, kind: input, shape index: {}]   ;;  %s3359_s1 = inlined_call_operand.hbm [shape: f32[16,128], index: 1, kind: input, shape index: {}]   ;;  %s3360_s2 = inlined_call_operand.hbm [shape: f32[16,8,128], index: 2, kind: input, shape index: {}]   ;;  %s3361_s3 = inlined_call_operand.hbm [shape: f32[16,8,128], index: 3, kind: input, shape index: {}]   ;;  %s3362_s4 = inlined_call_operand.hbm [shape: bf16[128,512], index: 4, kind: input, shape index: {}]   ;;  %s3363_s5 = inlined_call_operand.vmem [shape: f32[1,512], index: 5, kind: input, shape index: {}]   ;;  %s3364_s6 = inlined_call_operand.vmem [shape: f32[1,128], index: 6, kind: input, shape index: {}]   ;;  %s3365_s7 = inlined_call_operand.<no memory space> [shape: f32[1,1], index: 7, kind: input, shape index: {}]   ;;  %s3366_s8 = inlined_call_operand.hbm [shape: bf16[32,384], index: 8, kind: input, shape index: {}]   ;;  %s3367_s9 = inlined_call_operand.hbm [shape: bf16[128,384], index: 9, kind: input, shape index: {}]   ;;  %s3368_s10 = inlined_call_operand.vmem [shape: f32[1,384], index: 10, kind: input, shape index: {}]   ;;  %s3369_s11 = inlined_call_operand.hbm [shape: f32[16,128], index: 11, kind: output, shape index: {}]  }
   0x1   :  { %3392 = sst [smem:[#allocation28_spill]] %s3359_s1  ;;  %v16_v0 = vstv %s3365_s7 }
   0x2   :  { %3393 = sst [smem:[#allocation29_spill]] %s3362_s4  ;;  %17 = vst [vmem:[#allocation2] sm:$0x1] %v16_v0 }
   0x3   :  { %3394 = sst [smem:[#allocation30_spill]] %s3364_s6 }
   0x4   :  { %3395 = sst [smem:[#allocation31_spill]] %s3366_s8 }
   0x5   :  { %3396 = sst [smem:[#allocation32_spill]] %s3368_s10 }
   0x6   :  { %3397 = sst [smem:[#allocation33_spill]] %s3369_s11 }
   0x7   :  { %18 = vsyncpa [#allocation4], 0 }
   0x8   :  { %20 = vsyncpa [#allocation4 + $0x1], 0 }
   0x9   :  { %21 = vsyncpa [#allocation7], 0 }
   0xa   :  { %23 = vsyncpa [#allocation7 + $0x1], 0 }
   0xb   :  { %24 = vsyncpa [#allocation10], 0 }
   0xc   :  { %26 = vsyncpa [#allocation10 + $0x1], 0 }
   0xd   :  { %27 = vsyncpa [#allocation13], 0 }
   0xe   :  { %28 = vsyncpa [#allocation5], 0 }
   0xf   :  { %30 = vsyncpa [#allocation5 + $0x1], 0  ;;  %s2746_s19 = smov 0   ;;  %s2748_s20 = smov 0  }
  0x10   :  { %s2750_s21 = smov 0   ;;  %s2752_s22 = smov 0  }
  0x11 LB: > { %3398 = sst [smem:[#allocation22_spill]] %s2651_s19  ;;  %s2767_s7 = sadd.s32 4294967295, %s2663_s22   ;;  %s2663_s22 = sphi %s2752_s22, %s3441_s22   ;;  %s2659_s21 = sphi %s2750_s21, %s3443_s21   ;;  %s2655_s20 = sphi %s2748_s20, %s3445_s20   ;;  %s2651_s19 = sphi %s2746_s19, %s3444_s19  }
  0x12   : > { %3399 = sst [smem:[#allocation23_spill]] %s2659_s21  ;;  %s2001_s23 = sadd.s32 4294967294, %s2663_s22  }
  0x13   : > { %p56_p0 = scmp.ne.s32.totalorder %s2655_s20, %s2651_s19  ;;  %p3370_p1 = scmp.eq.s32.totalorder %s2767_s7, 0 }
  0x14   : > { %p311_p3 = scmp.eq.s32.totalorder %s2001_s23, 1  ;;  %p2002_p5 = scmp.ge.s32.totalorder %s2663_s22, 1 }
  0x15   : > { %p2776_p4 = por %p3370_p1, %p56_p0  ;;  %p318_p7 = scmp.lt.s32.totalorder %s2663_s22, 3 }
  0x16   : > { %p2781_p6 = por %p311_p3, %p56_p0  ;;  %s2665_s27 = smov [#allocation11]  }
  0x17   : > { %s3400_s24 = scalar_select %p2776_p4, 1, 0 }
  0x18   : > { %s3401_s25 = scalar_select %p2781_p6, 1, 0 }
  0x19   : > { %p2786_p8 = pnand %p2002_p5, %p318_p7  ;;  %s330_s28 = sshll.u32 %s2665_s27, 4  ;;  %s2790_s28 = int_to_ptr.vmem [resolvable:$true] %s330_s28 }
  0x1a   : > { %3402 = sst [smem:[#allocation24_spill]] %s3401_s25  ;;  %s2666_s30 = smov [#allocation12]  }
  0x1b   : > { %s3403_s26 = scalar_select %p2786_p8, 1, 0 }
  0x1c   : > { %p2162_p9 = pneg %p2786_p8  ;;  %s352_s12 = sshll.u32 %s2666_s30, 4  ;;  %s2801_s12 = int_to_ptr.vmem [resolvable:$true] %s352_s12 }
  0x1d   : > { %s3405_s4 = sld [smem:[#allocation29_spill]] }
  0x1e   : > { %p2797_p11 = pnand %p2162_p9, %p3370_p1 }
  0x20   : > { %s3404_s29 = scalar_select %p2797_p11, 1, 0 }
  0x21   : > { %p2811_p13 = pneg %p2797_p11 }
  0x23   : > { %s2377_s15 = scalar_lea.hbm %s3405_s4, 4096 }
  0x24   : > { %p2378_p12 = scmp.ne.s32.totalorder %s3405_s4, %s2377_s15  ;;  %p2384_p5 = scmp.lt.u32.totalorder %s2377_s15, %s3405_s4 }
  0x25   : > { %s3406_s18 = scalar_select %p2811_p13, 1, 0 }
  0x26   : > { %p2380_p0 = pnand %p2811_p13, %p2378_p12 }
  0x28   : > { %p2381_p3 = pneg %p2380_p0 }
  0x2a   : > { %p2386_p7 = pnand %p2384_p5, %p2381_p3 }
  0x2c   : > { %2389 = shalt.err (!%p2386_p7)
}
  0x2d   : > { %s2390_s30 = scalar_lea.vmem %s2790_s28, 4096  ;;  %p2398_p2 = scmp.lt.s32.totalorder %s2790_s28, %s2790_s28 }
  0x2e   : > { %p2391_p9 = scmp.ne.s32.totalorder %s2790_s28, %s2390_s30  ;;  %p2399_p6 = scmp.lt.s32.totalorder %s2390_s30, %s2390_s30 }
  0x30   : > { %p2393_p10 = pnand %p2391_p9, %p2811_p13  ;;  %p2400_p12 = por %p2399_p6, %p2398_p2 }
  0x32   : > { %p2394_p1 = pneg %p2393_p10 }
  0x34   : > { %p2401_p0 = pnand %p2400_p12, %p2394_p1 }
  0x36   : > { %2404 = shalt.err (!%p2401_p0)
}
  0x37   : > { %s2667_s13 = smov 256   ;;  %s2668_s14 = smov 16  }
  0x38   : > { %2165 = dma.hbm_to_vmem [thread:$0]  (!%p2797_p11), %s3405_s4, 4096, %s2790_s28, [#allocation10], %s2667_s13, %s2667_s13, %s2668_s14  }
  0x39   : > { %s3407_s8 = sld [smem:[#allocation31_spill]] }
  0x3f   : > { %s2405_s27 = scalar_lea.hbm %s3407_s8, 768 }
  0x40   : > { %p2406_p2 = scmp.ne.s32.totalorder %s3407_s8, %s2405_s27  ;;  %p2412_p10 = scmp.lt.u32.totalorder %s2405_s27, %s3407_s8 }
  0x42   : > { %p2408_p1 = pnand %p2406_p2, %p2811_p13 }
  0x44   : > { %p2409_p6 = pneg %p2408_p1 }
  0x46   : > { %p2414_p3 = pnand %p2412_p10, %p2409_p6 }
  0x48   : > { %2417 = shalt.err (!%p2414_p3)
}
  0x49   : > { %s2418_s28 = scalar_lea.vmem %s2801_s12, 768  ;;  %p2426_p12 = scmp.lt.s32.totalorder %s2801_s12, %s2801_s12 }
  0x4a   : > { %p2419_p5 = scmp.ne.s32.totalorder %s2801_s12, %s2418_s28  ;;  %p2427_p0 = scmp.lt.s32.totalorder %s2418_s28, %s2418_s28 }
  0x4c   : > { %p2421_p7 = pnand %p2419_p5, %p2811_p13  ;;  %p2428_p2 = por %p2427_p0, %p2426_p12 }
  0x4e   : > { %p2422_p9 = pneg %p2421_p7 }
  0x50   : > { %p2429_p1 = pnand %p2428_p2, %p2422_p9 }
  0x52   : > { %2432 = shalt.err (!%p2429_p1)
}
  0x53   : > { %s3374_s19 = smov 192   ;;  %s3375_s11 = smov 12  }
  0x54   : > { %2168 = dma.hbm_to_vmem [thread:$0]  (!%p2797_p11), %s3407_s8, 768, %s2801_s12, [#allocation13], %s3374_s19, %s3374_s19, %s3375_s11  }
  0x55   : > { %s2859_s14 = sadd.s32 1, %s2663_s22   ;;  %s43_s16 = sadd.s32 1, %s2659_s21 }
  0x56   : > { %3408 = sst [smem:[#allocation25_spill]] %s2859_s14  ;;  %s40_s15 = ssub.s32 %s2663_s22, %s2859_s14 }
  0x57   : > { %p41_p6 = scmp.eq.s32.totalorder %s40_s15, 0  ;;  %p50_p10 = scmp.ne.s32.totalorder %s2659_s21, %s2655_s20 }
  0x58   : > { %p51_p3 = scmp.eq.s32.totalorder %s2663_s22, 0  ;;  %p3410_p7 = scmp.eq.s32.totalorder %s2767_s7, 1 }
  0x59   : > { %s2868_s17 = scalar_select %p41_p6, %s2659_s21, %s43_s16  }
  0x5a   : > { %p52_p5 = por %p51_p3, %p50_p10  ;;  %p2872_p9 = por %p3410_p7, %p50_p10 }
  0x5b   : > { %3409 = sst [smem:[#allocation26_spill]] %s2868_s17  ;;  %p2192_p12 = scmp.lt.s32.totalorder %s2663_s22, 2 }
  0x5c   : > { %s3411_s23 = scalar_select %p2872_p9, 1, 0 }
  0x5d   : > { %s2878_s12 = sand.u32 1, %s2659_s21   ;;  %s3377_s30 = sshll.u32 %s2663_s22, 7 }
  0x5e   : > { %3412 = sst [smem:[#allocation27_spill]] %s3411_s23  ;;  %s3376_s27 = sshll.u32 %s2878_s12, 3 }
  0x5f   : > { %p2882_p0 = pnand %p2192_p12, %p52_p5  ;;  %s3380_s25 = sand.u32 1, %s2663_s22  }
  0x60   : > { %s3414_s1 = sld [smem:[#allocation28_spill]]  ;;  %s404_s19 = scalar_lea.vmem [#allocation6], %s3376_s27 }
  0x61   : > { %s3413_s28 = scalar_select %p2882_p0, 1, 0 }
  0x62   : > { %s411_s11 = sshll.u32 %s404_s19, 4  ;;  %s2901_s8 = scalar_lea.sflag [#allocation7], %s3380_s25  ;;  %s2897_s11 = int_to_ptr.vmem [resolvable:$true] %s411_s11 }
  0x63   : > { %p2907_p1 = pneg %p2882_p0 }
  0x66   : > { %s2892_s16 = scalar_lea.hbm %s3414_s1, %s3377_s30  ;;  %s2438_s19 = scalar_lea.hbm %s3414_s1, 256 }
  0x67   : > { %s2433_s17 = scalar_lea.hbm %s2892_s16, 128  ;;  %p2439_p3 = scmp.lt.u32.totalorder %s2892_s16, %s3414_s1 }
  0x68   : > { %p2434_p2 = scmp.ne.s32.totalorder %s2892_s16, %s2433_s17  ;;  %p2440_p5 = scmp.lt.u32.totalorder %s2438_s19, %s2433_s17 }
  0x69   : > { %p2442_p12 = scmp.lt.u32.totalorder %s2433_s17, %s2892_s16 }
  0x6a   : > { %p2436_p6 = pnand %p2907_p1, %p2434_p2  ;;  %p2441_p7 = por %p2440_p5, %p2439_p3 }
  0x6c   : > { %p2437_p10 = pneg %p2436_p6  ;;  %p2443_p9 = por %p2442_p12, %p2441_p7 }
  0x6e   : > { %p2444_p4 = pnand %p2443_p9, %p2437_p10 }
  0x70   : > { %2447 = shalt.err (!%p2444_p4)
}
  0x71   : > { %s2448_s25 = scalar_lea.vmem %s2897_s11, 128  ;;  %s2671_s27 = smov [#allocation6]  }
  0x72   : > { %p2449_p2 = scmp.ne.s32.totalorder %s2897_s11, %s2448_s25  ;;  %s2453_s15 = sshll.u32 %s2671_s27, 4  ;;  %s2454_s15 = int_to_ptr.vmem [resolvable:$false] %s2453_s15 }
  0x73   : > { %s2455_s4 = scalar_lea.vmem %s2454_s15, 256  ;;  %p2456_p11 = scmp.lt.s32.totalorder %s2897_s11, %s2454_s15 }
  0x74   : > { %p2451_p6 = pnand %p2449_p2, %p2907_p1  ;;  %p2457_p13 = scmp.lt.s32.totalorder %s2455_s4, %s2448_s25 }
  0x76   : > { %p2452_p8 = pneg %p2451_p6  ;;  %p2458_p3 = por %p2457_p13, %p2456_p11 }
  0x78   : > { %p2459_p5 = pnand %p2458_p3, %p2452_p8 }
  0x7a   : > { %2462 = shalt.err (!%p2459_p5)
}
  0x7b   : > { %2178 = dma.hbm_to_vmem [thread:$0]  (!%p2882_p0), %s2892_s16, 128, %s2897_s11, %s2901_s8  }
  0x7c   : > { %s3416_s17 = sshll.u32 %s2878_s12, 6  ;;  %s2672_s4 = smov [#allocation14]  }
  0x7d   : > { %s422_s30 = scalar_lea.vmem [#allocation8], %s3416_s17  ;;  %s3417_s27 = smov %s3416_s17 }
  0x7e   : > { %s429_s19 = sshll.u32 %s422_s30, 4  ;;  %s443_s15 = scalar_lea.vmem [#allocation9], %s3417_s27  ;;  %s2933_s19 = int_to_ptr.vmem [resolvable:$true] %s429_s19 }
  0x7f   : > { %s450_s25 = sshll.u32 %s443_s15, 4  ;;  %s365_s1 = sshll.u32 %s2672_s4, 4  ;;  %s2937_s25 = int_to_ptr.vmem [resolvable:$true] %s450_s25  ;;  %s366_s1 = int_to_ptr.vmem [resolvable:$true] %s365_s1 }
  0x80   : > { %s2463_s23 = scalar_lea.hbm %s3367_s9, 3072  ;;  %p3418_p8 = scmp.ne.s32.totalorder %s3406_s18, 0 }
  0x81   : > { %p2464_p4 = scmp.ne.s32.totalorder %s3367_s9, %s2463_s23  ;;  %p2470_p9 = scmp.lt.u32.totalorder %s2463_s23, %s3367_s9 }
  0x83   : > { %p2466_p11 = pnand %p2464_p4, %p3418_p8 }
  0x85   : > { %p2467_p13 = pneg %p2466_p11 }
  0x87   : > { %p2472_p10 = pnand %p2470_p9, %p2467_p13 }
  0x89   : > { %2475 = shalt.err (!%p2472_p10)
}
  0x8a   : > { %s2476_s17 = scalar_lea.vmem %s366_s1, 3072  ;;  %p2484_p6 = scmp.lt.s32.totalorder %s366_s1, %s366_s1 }
  0x8b   : > { %p2477_p7 = scmp.ne.s32.totalorder %s366_s1, %s2476_s17  ;;  %p2485_p3 = scmp.lt.s32.totalorder %s2476_s17, %s2476_s17 }
  0x8d   : > { %p2479_p12 = pnand %p2477_p7, %p3418_p8  ;;  %p2486_p5 = por %p2485_p3, %p2484_p6 }
  0x8f   : > { %p2480_p2 = pneg %p2479_p12 }
  0x91   : > { %p2487_p0 = pnand %p2486_p5, %p2480_p2 }
  0x93   : > { %2490 = shalt.err (!%p2487_p0)
}
  0x94   : > { %p3419_p4 = scmp.ne.s32.totalorder %s3404_s29, 0  ;;  %s3420_s6 = smov 12  }
  0x95   : > { %s3421_s10 = smov 192   ;;  %s3422_s18 = sshll.u32 %s2663_s22, 7 }
  0x96   : > { %2171 = dma.hbm_to_vmem [thread:$0]  (!%p3419_p4), %s3367_s9, 3072, %s366_s1, [#allocation13], %s3421_s10, %s3421_s10, %s3420_s6  }
  0x97   : > { %s2965_s27 = scalar_lea.hbm %s3358_s0, %s3422_s18  ;;  %s3423_s29 = sshll.u32 %s2878_s12, 3 }
  0x98   : > { %s386_s15 = scalar_lea.vmem [#allocation3], %s3423_s29  ;;  %s2098_s11 = sshll.u32 %s2663_s22, 10 }
  0x99   : > { %s393_s4 = sshll.u32 %s386_s15, 4  ;;  %s2977_s1 = scalar_lea.hbm %s3360_s2, %s2098_s11  ;;  %s2970_s4 = int_to_ptr.vmem [resolvable:$true] %s393_s4 }
  0x9a   : > { %s383_s6 = scalar_lea.sflag [#allocation4], %s2878_s12  ;;  %s2491_s10 = scalar_lea.hbm %s2965_s27, 128 }
  0x9b   : > { %p2492_p0 = scmp.ne.s32.totalorder %s2965_s27, %s2491_s10  ;;  %s2496_s18 = scalar_lea.hbm %s3358_s0, 256 }
  0x9c   : > { %p2497_p13 = scmp.lt.u32.totalorder %s2965_s27, %s3358_s0  ;;  %p2498_p9 = scmp.lt.u32.totalorder %s2496_s18, %s2491_s10 }
  0x9d   : > { %p2494_p8 = pnand %p2492_p0, %p2907_p1  ;;  %p2500_p7 = scmp.lt.u32.totalorder %s2491_s10, %s2965_s27 }
  0x9e   : > { %p2499_p10 = por %p2498_p9, %p2497_p13 }
  0x9f   : > { %p2495_p11 = pneg %p2494_p8 }
  0xa0   : > { %p2501_p12 = por %p2500_p7, %p2499_p10 }
  0xa2   : > { %p2502_p2 = pnand %p2501_p12, %p2495_p11 }
  0xa4   : > { %2505 = shalt.err (!%p2502_p2)
}
  0xa5   : > { %s2506_s12 = scalar_lea.vmem %s2970_s4, 128  ;;  %s2673_s29 = smov [#allocation3]  }
  0xa6   : > { %p2507_p6 = scmp.ne.s32.totalorder %s2970_s4, %s2506_s12  ;;  %s2511_s15 = sshll.u32 %s2673_s29, 4  ;;  %s2512_s15 = int_to_ptr.vmem [resolvable:$false] %s2511_s15 }
  0xa7   : > { %s2513_s16 = scalar_lea.vmem %s2512_s15, 256  ;;  %p2514_p4 = scmp.lt.s32.totalorder %s2970_s4, %s2512_s15 }
  0xa8   : > { %p2509_p3 = pnand %p2507_p6, %p2907_p1  ;;  %p2515_p0 = scmp.lt.s32.totalorder %s2513_s16, %s2506_s12 }
  0xaa   : > { %p2510_p5 = pneg %p2509_p3  ;;  %p2516_p8 = por %p2515_p0, %p2514_p4 }
  0xac   : > { %p2517_p13 = pnand %p2516_p8, %p2510_p5 }
  0xae   : > { %2520 = shalt.err (!%p2517_p13)
}
  0xaf   : > { %p3424_p11 = scmp.ne.s32.totalorder %s3413_s28, 0  ;;  %s2521_s17 = scalar_lea.hbm %s2977_s1, 1024 }
  0xb0   : > { %p2522_p9 = scmp.ne.s32.totalorder %s2977_s1, %s2521_s17  ;;  %s2526_s14 = scalar_lea.hbm %s3360_s2, 2048 }
  0xb1   : > { %2175 = dma.hbm_to_vmem [thread:$0]  (!%p3424_p11), %s2965_s27, 128, %s2970_s4, %s383_s6  }
  0xb2   : > { %p2524_p10 = pnand %p2522_p9, %p2907_p1  ;;  %p2527_p12 = scmp.lt.u32.totalorder %s2977_s1, %s3360_s2 }
  0xb3   : > { %p2528_p2 = scmp.lt.u32.totalorder %s2526_s14, %s2521_s17  ;;  %p2530_p3 = scmp.lt.u32.totalorder %s2521_s17, %s2977_s1 }
  0xb4   : > { %p2525_p7 = pneg %p2524_p10 }
  0xb5   : > { %p2529_p6 = por %p2528_p2, %p2527_p12 }
  0xb7   : > { %p2531_p5 = por %p2530_p3, %p2529_p6 }
  0xb9   : > { %p2532_p4 = pnand %p2531_p5, %p2525_p7 }
  0xbb   : > { %2535 = shalt.err (!%p2532_p4)
}
  0xbc   : > { %s2536_s27 = scalar_lea.vmem %s2933_s19, 1024  ;;  %s2674_s4 = smov [#allocation8]  }
  0xbd   : > { %p2537_p0 = scmp.ne.s32.totalorder %s2933_s19, %s2536_s27  ;;  %s2541_s6 = sshll.u32 %s2674_s4, 4  ;;  %s2542_s6 = int_to_ptr.vmem [resolvable:$false] %s2541_s6 }
  0xbe   : > { %s2543_s30 = scalar_lea.vmem %s2542_s6, 2048  ;;  %p2544_p9 = scmp.lt.s32.totalorder %s2933_s19, %s2542_s6 }
  0xbf   : > { %p2539_p8 = pnand %p2537_p0, %p2907_p1  ;;  %p2545_p10 = scmp.lt.s32.totalorder %s2543_s30, %s2536_s27 }
  0xc1   : > { %p2540_p13 = pneg %p2539_p8  ;;  %p2546_p12 = por %p2545_p10, %p2544_p9 }
  0xc3   : > { %p2547_p2 = pnand %p2546_p12, %p2540_p13 }
  0xc5   : > { %2550 = shalt.err (!%p2547_p2)
}
  0xc6   : > { %s2675_s12 = smov 128   ;;  %s2676_s29 = smov 8  }
  0xc7   : > { %2181 = dma.hbm_to_vmem [thread:$0]  (!%p3424_p11), %s2977_s1, 1024, %s2933_s19, %s2901_s8, %s2675_s12, %s2675_s12, %s2676_s29  }
  0xc8   : > { %s3031_s17 = scalar_lea.hbm %s3361_s3, %s2098_s11  ;;  %s3425_s10 = sand.u32 1, %s2663_s22  }
  0xc9   : > { %s3035_s21 = scalar_lea.sflag [#allocation10], %s3425_s10  ;;  %s2551_s14 = scalar_lea.hbm %s3031_s17, 1024 }
  0xca   : > { %p2552_p7 = scmp.ne.s32.totalorder %s3031_s17, %s2551_s14  ;;  %s2556_s19 = scalar_lea.hbm %s3361_s3, 2048 }
  0xcb   : > { %p2557_p5 = scmp.lt.u32.totalorder %s3031_s17, %s3361_s3  ;;  %p2558_p4 = scmp.lt.u32.totalorder %s2556_s19, %s2551_s14 }
  0xcc   : > { %p2554_p6 = pnand %p2552_p7, %p2907_p1  ;;  %p2560_p8 = scmp.lt.u32.totalorder %s2551_s14, %s3031_s17 }
  0xcd   : > { %p2559_p0 = por %p2558_p4, %p2557_p5 }
  0xce   : > { %p2555_p3 = pneg %p2554_p6 }
  0xcf   : > { %p2561_p13 = por %p2560_p8, %p2559_p0 }
  0xd1   : > { %p2562_p9 = pnand %p2561_p13, %p2555_p3 }
  0xd3   : > { %2565 = shalt.err (!%p2562_p9)
}
  0xd4   : > { %s2566_s11 = scalar_lea.vmem %s2937_s25, 1024  ;;  %s2677_s27 = smov [#allocation9]  }
  0xd5   : > { %p2567_p10 = scmp.ne.s32.totalorder %s2937_s25, %s2566_s11  ;;  %s2571_s4 = sshll.u32 %s2677_s27, 4  ;;  %s2572_s4 = int_to_ptr.vmem [resolvable:$false] %s2571_s4 }
  0xd6   : > { %s2573_s6 = scalar_lea.vmem %s2572_s4, 2048  ;;  %p2574_p7 = scmp.lt.s32.totalorder %s2937_s25, %s2572_s4 }
  0xd7   : > { %p2569_p12 = pnand %p2567_p10, %p2907_p1  ;;  %p2575_p6 = scmp.lt.s32.totalorder %s2573_s6, %s2566_s11 }
  0xd9   : > { %p2570_p2 = pneg %p2569_p12  ;;  %p2576_p5 = por %p2575_p6, %p2574_p7 }
  0xdb   : > { %p2577_p4 = pnand %p2576_p5, %p2570_p2 }
  0xdd   : > { %2580 = shalt.err (!%p2577_p4)
}
  0xde   : > { %2184 = dma.hbm_to_vmem [thread:$0]  (!%p3424_p11), %s3031_s17, 1024, %s2937_s25, %s3035_s21, %s2675_s12, %s2675_s12, %s2676_s29  }
  0xdf   : > { %p3426_p1 = scmp.ne.s32.totalorder %s3403_s26, 0 }
  0xe0   : > { %s3065_s13 = sand.u32 (!%p3426_p1), 1, %s2655_s20   ;;  %p3427_p3 = scmp.ne.s32.totalorder (!%p3426_p1), %s3400_s24, 0 }
  0xe1   : > { %462 = sbr.rel (%p3426_p1) target bundleno = 1626 (0x65a), region = 64  ;;  %s3068_s30 = sshll.u32 (!%p3426_p1), %s3065_s13, 3 }
  0xe2   : > { %s465_s28 = scalar_lea.sflag (!%p3426_p1), [#allocation4], %s3065_s13  ;;  %s468_s15 = scalar_lea.vmem (!%p3426_p1), [#allocation3], %s3068_s30 }
  0xe8   : > { %2626 = dma.done.wait (%p3427_p3), %s465_s28, 128  }
  0xe9   : > { %2628 = vsyncadd (%p3427_p3), %s465_s28, 4294967168  ;;  %s473_s26 = sand.u32 1, %s2767_s7   ;;  %s477_s12 = scalar_lea.vmem [#allocation6], %s3068_s30 }
  0xea   : > { %s474_s25 = scalar_lea.sflag [#allocation7], %s473_s26 }
  0xeb   : > { %2630 = dma.done.wait (%p3427_p3), %s474_s25, 1152  }
  0xec   : > { %2632 = vsyncadd (%p3427_p3), %s474_s25, 4294966144  ;;  %s2020_s29 = sshll.u32 %s3065_s13, 6  ;;  %s492_s17 = scalar_lea.sflag [#allocation10], %s473_s26 }
  0xed   : > { %s3083_s16 = scalar_lea.vmem [#allocation8], %s2020_s29  ;;  %s3085_s10 = scalar_lea.vmem [#allocation9], %s2020_s29 }
  0xee   : > { %2634 = dma.done.wait (%p3427_p3), %s492_s17, 1024  }
  0xef   : > { %2636 = vsyncadd (%p3427_p3), %s492_s17, 4294966272  ;;  %p3428_p11 = scmp.eq.s32.totalorder %s2767_s7, 0 }
  0xf1   : > { %2638 = dma.done.wait (%p3428_p11), [#allocation10], 4096   ;;  %p3429_p0 = pmov %p3428_p11 }
  0xf3   : > { %2640 = vsyncadd (%p3429_p0), [#allocation10], 4294963200  ;;  %p3430_p8 = pmov %p3429_p0 }
  0xf4   : > { %p3431_p13 = pmov %p3429_p0 }
  0xf5   : > { %2642 = dma.done.wait (%p3430_p8), [#allocation13], 3840  }
  0xf6   : > { %2644 = vsyncadd (%p3431_p13), [#allocation13], 4294963456  ;;  %v2678_v1 = vmov 0   ;;  %v2244_v2 = vld [vmem:[#allocation11 + $0x4] ss:$16 sps:$4 sm:$0xff]   ;;  %v602_v20 = vlaneseq  ;;  %v865_v45 = vld [vmem:[%s3085_s10 + $0x8] sm:$0xff] }
  0xf7   : > { %814 = vmatprep.mubr.bf16.mxu0 %v2678_v1  ;;  %2242 = vset.pattern.permute.xlu0 %v2678_v1  ;;  %v2246_v3 = vld [vmem:[#allocation11] ss:$16 sps:$4 sm:$0xff]   ;;  %v2247_v4 = vld [vmem:[#allocation11 + $0x24] ss:$16 sps:$4 sm:$0xff]   ;;  %v2679_v22 = vmov 1966171168  }
  0xf8   : > { %2243 = vset.pattern.permute.xlu1 %v2678_v1  ;;  %855 = vmatprep.mubr.bf16.mxu1 %v2678_v1  ;;  %v2249_v5 = vld [vmem:[#allocation11 + $0x20] ss:$16 sps:$4 sm:$0xff]   ;;  %v2250_v6 = vld [vmem:[#allocation11 + $0x44] ss:$16 sps:$4 sm:$0xff]   ;;  %v3110_v21 = vshrl.u32 %v602_v20, 7  ;;  %v875_v23 = vunpack.c.l.s4 %v2679_v22  ;;  %v867_v55 = vld [vmem:[%s3085_s10 + $0x18] sm:$0xff] }
  0xf9   : > { %782 = vmatprep.subr.bf16.mxu0 %v2244_v2  ;;  %v2252_v7 = vld [vmem:[#allocation11 + $0x40] ss:$16 sps:$4 sm:$0xff]   ;;  %v2253_v8 = vld [vmem:[#allocation11 + $0x64] ss:$16 sps:$4 sm:$0xff]   ;;  %v869_v61 = vld [vmem:[%s3085_s10 + $0x28] sm:$0xff]  ;;  %s3432_s8 = sld [smem:[#allocation30_spill]] }
  0xfa   : > { %783 = vmatpush1.bf16.msra.mxu0 %v2246_v3  ;;  %v2255_v9 = vld [vmem:[#allocation11 + $0x60] ss:$16 sps:$4 sm:$0xff]   ;;  %v2256_v10 = vld [vmem:[#allocation11 + $0x84] ss:$16 sps:$4 sm:$0xff]   ;;  %v3113_v24 = vsub.s32 0, %v3110_v21  ;;  %v876_v26 = vunpack.c.0.s8 %v875_v23  ;;  %vm1069_vm0 = vcmask 1041409  }
  0xfb   : > { %784 = vmatprep.subr.bf16.mxu0 %v2247_v4  ;;  %v2258_v11 = vld [vmem:[#allocation11 + $0x80] ss:$16 sps:$4 sm:$0xff]   ;;  %v2259_v12 = vld [vmem:[#allocation11 + $0xa4] ss:$16 sps:$4 sm:$0xff]   ;;  %vm1071_vm1 = vcmask 1042434   ;;  %vm1073_vm2 = vcmask 1043459  }
  0xfc   : > { %v2261_v13 = vld [vmem:[#allocation11 + $0xa0] ss:$16 sps:$4 sm:$0xff]   ;;  %v2262_v14 = vld [vmem:[#allocation11 + $0xc4] ss:$16 sps:$4 sm:$0xff]   ;;  %v879_v28 = vsub.s32 %v876_v26, %v3110_v21  ;;  %vm1075_vm3 = vcmask 1044484   ;;  %vm1077_vm4 = vcmask 1045509  }
  0xfd   : > { %v2264_v15 = vld [vmem:[#allocation11 + $0xc0] ss:$16 sps:$4 sm:$0xff]   ;;  %v2265_v16 = vld [vmem:[#allocation11 + $0xe4] ss:$16 sps:$4 sm:$0xff]   ;;  %vm1079_vm5 = vcmask 1046534   ;;  %vm1081_vm6 = vcmask 1047559  }
  0xfe   : > { %785 = vmatpush1.bf16.msra.mxu0 %v2249_v5  ;;  %v2267_v17 = vld [vmem:[#allocation11 + $0xe0] ss:$16 sps:$4 sm:$0xff]   ;;  %vm1084_vm7 = vcmask 64512   ;;  %vm2681_vm8 = vmmov 0   ;;  %vm1696_vm9 = vcmask 261120   ;;  %s3433_s23 = sld [smem:[#allocation32_spill]] }
  0xff   : > { %786 = vmatprep.subr.bf16.mxu0 %v2250_v6  ;;  %v564_v18 = vld [vmem:[%s477_s12] sm:$0xff]  ;;  %v864_v39 = vld [vmem:[%s3085_s10] sm:$0xff]  ;;  %s3434_s11 = sld [smem:[#allocation27_spill]]  ;;  %s2095_s27 = sshll.u32 %s2767_s7, 7 }
 0x100   : > { %v3105_v19 = vpack.c.bf16 %v564_v18, %v564_v18  ;;  %v3118_v25 = vld [vmem:[%s3363_s5] sm:$0xf]  ;;  %v866_v46 = vld [vmem:[%s3085_s10 + $0x10] sm:$0xff]  ;;  %s560_s4 = scalar_lea.vmem [#allocation15], %s3068_s30  ;;  %s3435_s26 = sld [smem:[#allocation33_spill]] }
 0x101   : > { %v605_v27 = vrot.slane %v3118_v25, %v3113_v24  ;;  %v868_v50 = vld [vmem:[%s3085_s10 + $0x20] sm:$0xff]  ;;  %v870_v2 = vld [vmem:[%s3085_s10 + $0x30] sm:$0xff]  ;;  %v871_v6 = vld [vmem:[%s3085_s10 + $0x38] sm:$0xff]  ;;  %s1837_s6 = sshll.u32 %s560_s4, 4  ;;  %s1824_s29 = scalar_lea.sflag [#allocation5], %s3065_s13  ;;  %s3316_s6 = int_to_ptr.vmem [resolvable:$true] %s1837_s6 }
 0x102   : > { %787 = vmatpush1.bf16.msra.mxu0 %v2252_v7  ;;  %v2058_v7 = vld [vmem:[%s3432_s8] ss:$0 sm:$0xff]  ;;  %s2581_s7 = scalar_lea.vmem %s3316_s6, 128  ;;  %s2682_s30 = smov [#allocation15]  }
 0x103   : > { %788 = vmatprep.subr.bf16.mxu0 %v2253_v8  ;;  %p2582_p9 = scmp.ne.s32.totalorder %s3316_s6, %s2581_s7 }
 0x105   : > { %p3436_p10 = scmp.ne.s32.totalorder %s3434_s11, 0 }
 0x106   : > { %789 = vmatpush1.bf16.msra.mxu0 %v2255_v9  ;;  %s3314_s25 = scalar_lea.hbm %s3435_s26, %s2095_s27 }
 0x107   : > { %790 = vmatprep.subr.bf16.mxu0 %v2256_v10  ;;  %p2583_p12 = pnand %p2582_p9, %p3436_p10 }
 0x109   : > { %p2584_p2 = pneg %p2583_p12 }
 0x10a   : > { %791 = vmatpush1.bf16.msra.mxu0 %v2258_v11 }
 0x10b   : > { %792 = vmatprep.subr.bf16.mxu0 %v2259_v12 }
 0x10e   : > { %793 = vmatpush1.bf16.msra.mxu0 %v2261_v13 }
 0x10f   : > { %794 = vmatprep.subr.bf16.mxu0 %v2262_v14 }
 0x112   : > { %795 = vmatpush1.bf16.msra.mxu0 %v2264_v15 }
 0x113   : > { %796 = vmatprep.subr.bf16.mxu0 %v2265_v16 }
 0x116   : > { %797 = vmatpush1.bf16.msra.mxu0 %v2267_v17 }
 0x119   : > { %815 = vmatmul.mubr.bf16.vlgmr.msra.gmra.mrb[0].mxu0 %v3105_v19 }
 0x11a   : > { %1615 = vmatprep.mubr.bf16.mxu0 %v2678_v1 }
 0x1ec   : > { %v816_v29 = vpop.f32.mrb[0].mxu0 }
 0x1ed   : > { %v817_v30 = vadd.f32 %v816_v29, %v605_v27  ;;  %v3123_v31 = vpop.f32.mrb[1].mxu0 }
 0x1ee   : > { %v820_v32 = vpop.f32.mrb[2].mxu0 }
 0x1ef   : > { %v873_v33 = vcombine.high %v817_v30, %v817_v30  ;;  %v880_v34 = vrot.slane %v817_v30, %v879_v28  ;;  %v821_v35 = vpop.f32.mrb[3].mxu0  ;;  %v2059_v30 = vld [vmem:[#allocation2] ss:$0 sm:$0xff] }
 0x1f1   : > { %v887_v36 = vrot.slane %v873_v33, %v879_v28  ;;  %v888_v37 = vcombine.high %v880_v34, %v880_v34  ;;  %v896_v38 = vrot.slane %v880_v34, %v879_v28 }
 0x1f3   : > { %v889_v40 = vcombine.high %v887_v36, %v887_v36  ;;  %v903_v41 = vrot.slane %v887_v36, %v879_v28  ;;  %v910_v42 = vrot.slane %v888_v37, %v879_v28  ;;  %v918_v43 = vcombine.high %v896_v38, %v896_v38 }
 0x1f4   : > { %v925_v44 = vrot.slane %v896_v38, %v3113_v24  ;;  %v1036_v37 = vand.u32 127, %v602_v20 }
 0x1f5   : > { %v917_v47 = vrot.slane %v889_v40, %v879_v28  ;;  %v920_v48 = vcombine.high %v910_v42, %v910_v42  ;;  %v929_v49 = vrot.slane %v910_v42, %v3113_v24  ;;  %v919_v51 = vcombine.high %v903_v41, %v903_v41 }
 0x1f6   : > { %v933_v52 = vrot.slane %v918_v43, %v3113_v24  ;;  %v941_v53 = vrot.slane %v903_v41, %v3113_v24  ;;  %v962_v54 = vadd.f32 %v925_v44, %v864_v39  ;;  %v3146_v40 = vsub.s32 %v1036_v37, %v3110_v21 }
 0x1f7   : > { %v937_v56 = vrot.slane %v920_v48, %v3113_v24  ;;  %v963_v57 = vadd.f32 %v929_v49, %v865_v45  ;;  %v945_v59 = vrot.slane %v917_v47, %v3113_v24  ;;  %v921_v62 = vcombine.high %v917_v47, %v917_v47 }
 0x1f8   : > { %v964_v58 = vadd.f32 %v933_v52, %v866_v46  ;;  %2332 = vtanh.f32 %v962_v54  ;;  %v966_v60 = vadd.f32 %v941_v53, %v868_v50  ;;  %v949_v63 = vrot.slane %v919_v51, %v3113_v24 }
 0x1f9   : > { %v965_v0 = vadd.f32 %v937_v56, %v867_v55  ;;  %2334 = vtanh.f32 %v963_v57  ;;  %v967_v3 = vadd.f32 %v945_v59, %v869_v61  ;;  %v953_v4 = vrot.slane %v921_v62, %v3113_v24 }
 0x1fa   : > { %2336 = vtanh.f32 %v964_v58  ;;  %v968_v5 = vadd.f32 %v949_v63, %v870_v2 }
 0x1fb   : > { %2338 = vtanh.f32 %v966_v60  ;;  %v969_v9 = vadd.f32 %v953_v4, %v871_v6  ;;  %v3175_v4 = vsub.s32 1, %v3110_v21 }
 0x1fc   : > { %2340 = vtanh.f32 %v965_v0 }
 0x1fd   : > { %2342 = vtanh.f32 %v967_v3  ;;  %v1119_v3 = vsub.s32 7, %v3110_v21 }
 0x1fe   : > { %2344 = vtanh.f32 %v968_v5  ;;  %v3178_v5 = vsub.s32 2, %v3110_v21 }
 0x1ff   : > { %2346 = vtanh.f32 %v969_v9 }
 0x202   : > { %v2333_v8 = vpop.eup %2332 }
 0x203   : > { %v985_v10 = vmul.f32 %v2333_v8, %v2058_v7  ;;  %v2335_v11 = vpop.eup %2334 }
 0x204   : > { %v2337_v12 = vpop.eup %2336  ;;  %v986_v15 = vmul.f32 %v2335_v11, %v2058_v7 }
 0x205   : > { %993 = vadd.xlane.f32.xlu0 %v985_v10  ;;  %v2339_v13 = vpop.eup %2338  ;;  %v987_v14 = vmul.f32 %v2337_v12, %v2058_v7  ;;  %v3185_v10 = vsub.s32 3, %v3110_v21 }
 0x206   : > { %v2341_v16 = vpop.eup %2340  ;;  %v989_v22 = vmul.f32 %v2339_v13, %v2058_v7 }
 0x207   : > { %997 = vadd.xlane.f32.xlu1 %v987_v14  ;;  %v2343_v17 = vpop.eup %2342  ;;  %v988_v18 = vmul.f32 %v2341_v16, %v2058_v7 }
 0x208   : > { %v2345_v23 = vpop.eup %2344  ;;  %v990_v26 = vmul.f32 %v2343_v17, %v2058_v7 }
 0x209   : > { %995 = vadd.xlane.f32.xlu0 %v986_v15  ;;  %v991_v27 = vmul.f32 %v2345_v23, %v2058_v7  ;;  %v2347_v28 = vpop.eup %2346  ;;  %v1107_v15 = vsub.s32 4, %v3110_v21  ;;  %v1111_v23 = vsub.s32 5, %v3110_v21 }
 0x20a   : > { %v992_v29 = vmul.f32 %v2347_v28, %v2058_v7 }
 0x20b   : > { %999 = vadd.xlane.f32.xlu1 %v988_v18 }
 0x20d   : > { %1001 = vadd.xlane.f32.xlu0 %v989_v22 }
 0x20f   : > { %1003 = vadd.xlane.f32.xlu1 %v990_v26 }
 0x211   : > { %1005 = vadd.xlane.f32.xlu0 %v991_v27 }
 0x213   : > { %1007 = vadd.xlane.f32.xlu1 %v992_v29 }
 0x227   : > { %1016 = vperm.xlu0 %2242, %v2059_v30   ;;  %v1115_v30 = vsub.s32 6, %v3110_v21  ;;  %v2302_v21 = vld [vmem:[#allocation14 + $0x34] ss:$12 sps:$4 sm:$0xff]  }
 0x292   : > { %v994_v32 = vpop.xlane.xlu0 %993 }
 0x294   : > { %v998_v34 = vpop.xlane.xlu1 %997 }
 0x296   : > { %v996_v33 = vpop.xlane.xlu0 %995 }
 0x298   : > { %v1000_v36 = vpop.xlane.xlu1 %999 }
 0x29a   : > { %v1002_v35 = vpop.xlane.xlu0 %1001 }
 0x29c   : > { %v1004_v39 = vpop.xlane.xlu1 %1003 }
 0x29e   : > { %v1006_v38 = vpop.xlane.xlu0 %1005 }
 0x2a0   : > { %v1008_v50 = vpop.xlane.xlu1 %1007 }
 0x2a6   : > { %v1017_v41 = vpop.permute.xlu0 %1016 }
 0x2a7   : > { %v1019_v42 = vadd.f32 %v1017_v41, %v994_v32  ;;  %v1020_v43 = vadd.f32 %v1017_v41, %v996_v33  ;;  %v1021_v44 = vadd.f32 %v1017_v41, %v998_v34  ;;  %v1022_v45 = vadd.f32 %v1017_v41, %v1000_v36 }
 0x2a8   : > { %v3148_v46 = vadd.f32 %v1017_v41, %v1002_v35  ;;  %v3150_v47 = vadd.f32 %v1017_v41, %v1004_v39  ;;  %v3155_v51 = vadd.f32 %v1017_v41, %v1006_v38  ;;  %v1026_v52 = vadd.f32 %v1017_v41, %v1008_v50 }
 0x2a9   : > { %v1040_v48 = vrot.slane %v1019_v42, %v3146_v40  ;;  %v1044_v20 = vrot.slane %v1020_v43, %v3146_v40  ;;  %v1048_v49 = vrot.slane %v1021_v44, %v3146_v40  ;;  %v1052_v53 = vrot.slane %v1022_v45, %v3146_v40 }
 0x2aa   : > { %v1056_v55 = vrot.slane %v3148_v46, %v3146_v40  ;;  %v1060_v57 = vrot.slane %v3150_v47, %v3146_v40  ;;  %v1064_v59 = vrot.slane %v3155_v51, %v3146_v40  ;;  %v1068_v61 = vrot.slane %v1026_v52, %v3146_v40 }
 0x2ab   : > { %v1070_v54 = vsel %vm1069_vm0, %v1044_v20, %v1040_v48 }
 0x2ac   : > { %v1072_v56 = vsel %vm1071_vm1, %v1048_v49, %v1070_v54 }
 0x2ad   : > { %v1074_v58 = vsel %vm1073_vm2, %v1052_v53, %v1072_v56 }
 0x2ae   : > { %v1076_v60 = vsel %vm1075_vm3, %v1056_v55, %v1074_v58 }
 0x2af   : > { %v1078_v62 = vsel %vm1077_vm4, %v1060_v57, %v1076_v60 }
 0x2b0   : > { %v1080_v63 = vsel %vm1079_vm5, %v1064_v59, %v1078_v62 }
 0x2b1   : > { %v1082_v0 = vsel %vm1081_vm6, %v1068_v61, %v1080_v63 }
 0x2b2   : > { %v1085_v2 = vsel %vm1084_vm7, %v1082_v0, -inf }
 0x2b3   : > { %1086 = vmax.xlane.f32.xlu1 %v1085_v2 }
 0x340   : > { %v1087_v6 = vpop.xlane.xlu1 %1086 }
 0x341   : > { %v1092_v7 = vrot.slane %v1087_v6, %v3113_v24  ;;  %v1096_v8 = vrot.slane %v1087_v6, %v3175_v4  ;;  %v1120_v9 = vrot.slane %v1087_v6, %v1119_v3  ;;  %v1100_v11 = vrot.slane %v1087_v6, %v3178_v5 }
 0x342   : > { %v1104_v17 = vrot.slane %v1087_v6, %v3185_v10  ;;  %v1108_v27 = vrot.slane %v1087_v6, %v1107_v15  ;;  %v1112_v32 = vrot.slane %v1087_v6, %v1111_v23  ;;  %v1116_v36 = vrot.slane %v1087_v6, %v1115_v30 }
 0x343   : > { %v1129_v12 = vsub.f32 %v1019_v42, %v1092_v7  ;;  %v1130_v13 = vsub.f32 %v1020_v43, %v1096_v8  ;;  %v1136_v16 = vsub.f32 %v1026_v52, %v1120_v9  ;;  %v1131_v18 = vsub.f32 %v1021_v44, %v1100_v11 }
 0x344   : > { %v1132_v28 = vsub.f32 %v1022_v45, %v1104_v17  ;;  %v1133_v33 = vsub.f32 %v3148_v46, %v1108_v27  ;;  %v1134_v37 = vsub.f32 %v3150_v47, %v1112_v32  ;;  %v1135_v41 = vsub.f32 %v3155_v51, %v1116_v36  ;;  %v2271_v17 = vld [vmem:[#allocation11 + $0x2c] ss:$16 sps:$4 sm:$0xff]   ;;  %v2279_v27 = vld [vmem:[#allocation11 + $0x68] ss:$16 sps:$4 sm:$0xff]  }
 0x345   : > { %v1137_v14 = vmul.f32 1.442695, %v1129_v12  ;;  %v1139_v22 = vmul.f32 1.442695, %v1130_v13  ;;  %v1151_v26 = vmul.f32 1.442695, %v1136_v16 }
 0x346   : > { %v1141_v29 = vmul.f32 1.442695, %v1131_v18  ;;  %v1143_v34 = vmul.f32 1.442695, %v1132_v28  ;;  %v1145_v38 = vmul.f32 1.442695, %v1133_v33 }
 0x347   : > { %2348 = vpow2.f32 %v1137_v14  ;;  %v1147_v42 = vmul.f32 1.442695, %v1134_v37  ;;  %v1149_v45 = vmul.f32 1.442695, %v1135_v41  ;;  %v2268_v14 = vld [vmem:[#allocation11 + $0xc] ss:$16 sps:$4 sm:$0xff]  }
 0x348   : > { %2350 = vpow2.f32 %v1139_v22  ;;  %v2270_v16 = vld [vmem:[#allocation11 + $0x8] ss:$16 sps:$4 sm:$0xff]   ;;  %823 = vmatprep.subr.bf16.mxu1 %v2268_v14  ;;  %v2274_v22 = vld [vmem:[#allocation11 + $0x4c] ss:$16 sps:$4 sm:$0xff]  }
 0x349   : > { %2352 = vpow2.f32 %v1151_v26  ;;  %824 = vmatpush1.bf16.msra.mxu1 %v2270_v16  ;;  %v2273_v18 = vld [vmem:[#allocation11 + $0x28] ss:$16 sps:$4 sm:$0xff]   ;;  %v2326_v16 = vld [vmem:[#allocation12 + $0x4] ss:$12 sps:$4 sm:$0xff]  }
 0x34a   : > { %2354 = vpow2.f32 %v1141_v29  ;;  %825 = vmatprep.subr.bf16.mxu1 %v2271_v17  ;;  %v2276_v26 = vld [vmem:[#allocation11 + $0x48] ss:$16 sps:$4 sm:$0xff]   ;;  %v2323_v17 = vld [vmem:[#allocation14 + $0xb0] ss:$12 sps:$4 sm:$0xff]  }
 0x34b   : > { %2356 = vpow2.f32 %v1143_v34  ;;  %v2320_v14 = vld [vmem:[#allocation14 + $0xa8] ss:$12 sps:$4 sm:$0xff]  }
 0x34c   : > { %2358 = vpow2.f32 %v1145_v38 }
 0x34d   : > { %2360 = vpow2.f32 %v1147_v42  ;;  %826 = vmatpush1.bf16.msra.mxu1 %v2273_v18  ;;  %v2280_v42 = vld [vmem:[#allocation11 + $0x8c] ss:$16 sps:$4 sm:$0xff]  }
 0x34e   : > { %2362 = vpow2.f32 %v1149_v45  ;;  %827 = vmatprep.subr.bf16.mxu1 %v2274_v22  ;;  %v2282_v45 = vld [vmem:[#allocation11 + $0x88] ss:$16 sps:$4 sm:$0xff]  }
 0x34f   : > { %v1279_v22 = vld [vmem:[%s3083_s16 + $0x8] sm:$0xff] }
 0x351   : > { %v3197_v35 = vpop.eup %2348  ;;  %828 = vmatpush1.bf16.msra.mxu1 %v2276_v26  ;;  %v1278_v26 = vld [vmem:[%s3083_s16] sm:$0xff] }
 0x352   : > { %1162 = vperm.xlu1 %2243, %v3197_v35   ;;  %v3203_v39 = vpop.eup %2350 }
 0x353   : > { %v3207_v43 = vpop.eup %2352 }
 0x354   : > { %v3209_v44 = vpop.eup %2354  ;;  %1183 = vperm.xlu0 %2242, %v3207_v43  }
 0x355   : > { %v3213_v46 = vpop.eup %2356 }
 0x356   : > { %1165 = vperm.xlu1 %2243, %v3203_v39   ;;  %v3216_v47 = vpop.eup %2358 }
 0x357   : > { %v3219_v48 = vpop.eup %2360 }
 0x358   : > { %v3222_v20 = vpop.eup %2362 }
 0x35a   : > { %1168 = vperm.xlu1 %2243, %v3209_v44  }
 0x35e   : > { %1171 = vperm.xlu1 %2243, %v3213_v46  }
 0x362   : > { %1174 = vperm.xlu1 %2243, %v3216_v47  }
 0x366   : > { %1177 = vperm.xlu1 %2243, %v3219_v48  }
 0x36a   : > { %1180 = vperm.xlu1 %2243, %v3222_v20  }
 0x3d1   : > { %v1163_v49 = vpop.permute.xlu1 %1162 }
 0x3d2   : > { %v1188_v56 = vrot.slane %v1163_v49, %v3146_v40 }
 0x3d3   : > { %v1184_v62 = vpop.permute.xlu0 %1183 }
 0x3d4   : > { %v1216_v8 = vrot.slane %v1184_v62, %v3146_v40  ;;  %v2307_v62 = vld [vmem:[#allocation14 + $0x50] ss:$12 sps:$4 sm:$0xff]  }
 0x3d5   : > { %v1166_v50 = vpop.permute.xlu1 %1165 }
 0x3d6   : > { %v1192_v54 = vrot.slane %v1166_v50, %v3146_v40  ;;  %v2283_v50 = vld [vmem:[#allocation11 + $0xac] ss:$16 sps:$4 sm:$0xff]  }
 0x3d8   : > { %v1217_v60 = vsel %vm1069_vm0, %v1192_v54, %v1188_v56  ;;  %v2289_v54 = vld [vmem:[#allocation11 + $0xec] ss:$16 sps:$4 sm:$0xff]   ;;  %v2294_v56 = vld [vmem:[#allocation14 + $0x4] ss:$12 sps:$4 sm:$0xff]  }
 0x3d9   : > { %v1169_v51 = vpop.permute.xlu1 %1168  ;;  %1583 = vmatprep.subr.bf16.mxu0 %v2294_v56 }
 0x3da   : > { %v1196_v55 = vrot.slane %v1169_v51, %v3146_v40  ;;  %v2285_v51 = vld [vmem:[#allocation11 + $0xa8] ss:$16 sps:$4 sm:$0xff]  }
 0x3dc   : > { %v1218_v63 = vsel %vm1071_vm1, %v1196_v55, %v1217_v60  ;;  %v2291_v55 = vld [vmem:[#allocation11 + $0xe8] ss:$16 sps:$4 sm:$0xff]  }
 0x3dd   : > { %v1172_v52 = vpop.permute.xlu1 %1171  ;;  %v2296_v60 = vld [vmem:[#allocation14 + $0x18] ss:$12 sps:$4 sm:$0xff]  }
 0x3de   : > { %v1200_v57 = vrot.slane %v1172_v52, %v3146_v40  ;;  %v2286_v52 = vld [vmem:[#allocation11 + $0xcc] ss:$16 sps:$4 sm:$0xff]  }
 0x3e0   : > { %v1219_v0 = vsel %vm1073_vm2, %v1200_v57, %v1218_v63  ;;  %v2292_v57 = vld [vmem:[#allocation14] ss:$12 sps:$4 sm:$0xff]   ;;  %v2310_v63 = vld [vmem:[#allocation14 + $0x64] ss:$12 sps:$4 sm:$0xff]  }
 0x3e1   : > { %v1175_v53 = vpop.permute.xlu1 %1174  ;;  %1584 = vmatpush1.bf16.msra.mxu0 %v2292_v57 }
 0x3e2   : > { %v1204_v59 = vrot.slane %v1175_v53, %v3146_v40  ;;  %v2288_v53 = vld [vmem:[#allocation11 + $0xc8] ss:$16 sps:$4 sm:$0xff]  }
 0x3e4   : > { %v1220_v6 = vsel %vm1075_vm3, %v1204_v59, %v1219_v0  ;;  %v2298_v59 = vld [vmem:[#allocation14 + $0x1c] ss:$12 sps:$4 sm:$0xff]   ;;  %v2308_v0 = vld [vmem:[#allocation14 + $0x60] ss:$12 sps:$4 sm:$0xff]  }
 0x3e5   : > { %v1178_v58 = vpop.permute.xlu1 %1177  ;;  %1585 = vmatprep.subr.bf16.mxu0 %v2298_v59 }
 0x3e6   : > { %v1208_v61 = vrot.slane %v1178_v58, %v3146_v40  ;;  %v2295_v58 = vld [vmem:[#allocation14 + $0x8] ss:$12 sps:$4 sm:$0xff]   ;;  %1586 = vmatpush1.bf16.msra.mxu0 %v2296_v60  ;;  %v1284_v60 = vld [vmem:[%s3083_s16 + $0x30] sm:$0xff] }
 0x3e7   : > { %1587 = vmatprep.subr.bf16.mxu0 %v2302_v21 }
 0x3e8   : > { %v1221_v9 = vsel %vm1077_vm4, %v1208_v61, %v1220_v6  ;;  %v2303_v61 = vld [vmem:[#allocation14 + $0x38] ss:$12 sps:$4 sm:$0xff]   ;;  %v2314_v6 = vld [vmem:[#allocation14 + $0x7c] ss:$12 sps:$4 sm:$0xff]  }
 0x3e9   : > { %v1181_v2 = vpop.permute.xlu1 %1180 }
 0x3ea   : > { %v1212_v7 = vrot.slane %v1181_v2, %v3146_v40  ;;  %v2277_v40 = vld [vmem:[#allocation11 + $0x6c] ss:$16 sps:$4 sm:$0xff]   ;;  %v2311_v2 = vld [vmem:[#allocation14 + $0x68] ss:$12 sps:$4 sm:$0xff]  }
 0x3eb   : > { %829 = vmatprep.subr.bf16.mxu1 %v2277_v40 }
 0x3ec   : > { %v1222_v11 = vsel %vm1079_vm5, %v1212_v7, %v1221_v9  ;;  %830 = vmatpush1.bf16.msra.mxu1 %v2279_v27  ;;  %v2312_v7 = vld [vmem:[#allocation14 + $0x78] ss:$12 sps:$4 sm:$0xff]   ;;  %v2318_v9 = vld [vmem:[#allocation14 + $0x94] ss:$12 sps:$4 sm:$0xff]  }
 0x3ed   : > { %v1223_v12 = vsel %vm1081_vm6, %v1216_v8, %v1222_v11  ;;  %831 = vmatprep.subr.bf16.mxu1 %v2280_v42  ;;  %v2315_v8 = vld [vmem:[#allocation14 + $0x80] ss:$12 sps:$4 sm:$0xff]   ;;  %v2316_v11 = vld [vmem:[#allocation14 + $0x90] ss:$12 sps:$4 sm:$0xff]  }
 0x3ee   : > { %v1225_v13 = vsel %vm1084_vm7, %v1223_v12, 0.0  ;;  %v2322_v12 = vld [vmem:[#allocation14 + $0xac] ss:$12 sps:$4 sm:$0xff]  }
 0x3ef   : > { %1226 = vadd.xlane.f32.xlu1 %v1225_v13  ;;  %v2319_v13 = vld [vmem:[#allocation14 + $0x98] ss:$12 sps:$4 sm:$0xff]  }
 0x3f0   : > { %832 = vmatpush1.bf16.msra.mxu1 %v2282_v45 }
 0x3f1   : > { %833 = vmatprep.subr.bf16.mxu1 %v2283_v50 }
 0x3f4   : > { %834 = vmatpush1.bf16.msra.mxu1 %v2285_v51  ;;  %v1282_v51 = vld [vmem:[%s3083_s16 + $0x20] sm:$0xff] }
 0x3f5   : > { %835 = vmatprep.subr.bf16.mxu1 %v2286_v52 }
 0x3f8   : > { %836 = vmatpush1.bf16.msra.mxu1 %v2288_v53 }
 0x3f9   : > { %837 = vmatprep.subr.bf16.mxu1 %v2289_v54  ;;  %v1283_v54 = vld [vmem:[%s3083_s16 + $0x28] sm:$0xff] }
 0x3fc   : > { %838 = vmatpush1.bf16.msra.mxu1 %v2291_v55 }
 0x3ff   : > { %856 = vmatmul.mubr.bf16.vlgmr.msra.gmra.mrb[0].mxu1 %v3105_v19  ;;  %v2304_v19 = vld [vmem:[#allocation14 + $0x48] ss:$12 sps:$4 sm:$0xff]  }
 0x47c   : > { %v1227_v28 = vpop.xlane.xlu1 %1226 }
 0x47d   : > { %2364 = vrcp.f32 %v1227_v28 }
 0x487   : > { %v2365_v29 = vpop.eup %2364 }
 0x488   : > { %v1233_v32 = vrot.slane %v2365_v29, %v3113_v24  ;;  %v1237_v34 = vrot.slane %v2365_v29, %v3175_v4  ;;  %v1241_v37 = vrot.slane %v2365_v29, %v3178_v5  ;;  %v1245_v41 = vrot.slane %v2365_v29, %v3185_v10 }
 0x48a   : > { %v1270_v33 = vmul.f32 %v3197_v35, %v1233_v32  ;;  %v1271_v36 = vmul.f32 %v3203_v39, %v1237_v34  ;;  %v1272_v38 = vmul.f32 %v3209_v44, %v1241_v37  ;;  %v1273_v49 = vmul.f32 %v3213_v46, %v1245_v41  ;;  %v1281_v37 = vld [vmem:[%s3083_s16 + $0x18] sm:$0xff] }
 0x48b   : > { %v1249_v35 = vrot.slane %v2365_v29, %v1107_v15  ;;  %v1253_v44 = vrot.slane %v2365_v29, %v1111_v23  ;;  %v1257_v15 = vrot.slane %v2365_v29, %v1115_v30  ;;  %v1261_v23 = vrot.slane %v2365_v29, %v1119_v3  ;;  %v2300_v3 = vld [vmem:[#allocation14 + $0x30] ss:$12 sps:$4 sm:$0xff]   ;;  %v1280_v29 = vld [vmem:[%s3083_s16 + $0x10] sm:$0xff] }
 0x48c   : > { %1288 = vperm.xlu0 %2242, %v1270_v33   ;;  %1588 = vmatpush1.bf16.msra.mxu0 %v2300_v3 }
 0x48d   : > { %v1274_v39 = vmul.f32 %v3216_v47, %v1249_v35  ;;  %v1275_v46 = vmul.f32 %v3219_v48, %v1253_v44  ;;  %v1276_v47 = vmul.f32 %v3222_v20, %v1257_v15  ;;  %v2680_v48 = vmov 0.0   ;;  %v2299_v20 = vld [vmem:[#allocation14 + $0x20] ss:$12 sps:$4 sm:$0xff]  }
 0x48e   : > { %2112 = vmatprep.subr.bf16.mxu1 %v2680_v48  ;;  %v1277_v30 = vmul.f32 %v3207_v43, %v1261_v23  ;;  %v2306_v43 = vld [vmem:[#allocation14 + $0x4c] ss:$12 sps:$4 sm:$0xff]   ;;  %2128 = vmatprep.mubr.msk.bf16.mxu1 %vm2681_vm8, %v2680_v48 }
 0x48f   : > { %2113 = vmatpush3.bf16.msra.mxu1 %v2295_v58  ;;  %1589 = vmatprep.subr.bf16.mxu0 %v2306_v43 }
 0x490   : > { %1293 = vperm.xlu0 %2242, %v1271_v36   ;;  %2114 = vmatprep.subr.bf16.mxu1 %v2680_v48 }
 0x491   : > { %1590 = vmatpush1.bf16.msra.mxu0 %v2304_v19 }
 0x492   : > { %1591 = vmatprep.subr.bf16.mxu0 %v2310_v63 }
 0x493   : > { %2115 = vmatpush3.bf16.msra.mxu1 %v2299_v20 }
 0x494   : > { %1298 = vperm.xlu0 %2242, %v1272_v38   ;;  %2116 = vmatprep.subr.bf16.mxu1 %v2680_v48 }
 0x495   : > { %1592 = vmatpush1.bf16.msra.mxu0 %v2308_v0 }
 0x496   : > { %1593 = vmatprep.subr.bf16.mxu0 %v2314_v6  ;;  %v1285_v6 = vld [vmem:[%s3083_s16 + $0x38] sm:$0xff] }
 0x497   : > { %2117 = vmatpush3.bf16.msra.mxu1 %v2303_v61 }
 0x498   : > { %1303 = vperm.xlu0 %2242, %v1273_v49   ;;  %2118 = vmatprep.subr.bf16.mxu1 %v2680_v48 }
 0x499   : > { %1594 = vmatpush1.bf16.msra.mxu0 %v2312_v7 }
 0x49a   : > { %1595 = vmatprep.subr.bf16.mxu0 %v2318_v9 }
 0x49b   : > { %2119 = vmatpush3.bf16.msra.mxu1 %v2307_v62 }
 0x49c   : > { %1308 = vperm.xlu0 %2242, %v1274_v39   ;;  %2120 = vmatprep.subr.bf16.mxu1 %v2680_v48 }
 0x49d   : > { %1596 = vmatpush1.bf16.msra.mxu0 %v2316_v11 }
 0x49e   : > { %1597 = vmatprep.subr.bf16.mxu0 %v2322_v12 }
 0x49f   : > { %2121 = vmatpush3.bf16.msra.mxu1 %v2311_v2 }
 0x4a0   : > { %1313 = vperm.xlu0 %2242, %v1275_v46   ;;  %2122 = vmatprep.subr.bf16.mxu1 %v2680_v48 }
 0x4a1   : > { %1598 = vmatpush1.bf16.msra.mxu0 %v2320_v14 }
 0x4a2   : > { %1700 = vmatprep.subr.bf16.mxu0 %v2326_v16 }
 0x4a3   : > { %2123 = vmatpush3.bf16.msra.mxu1 %v2315_v8 }
 0x4a4   : > { %1318 = vperm.xlu0 %2242, %v1276_v47   ;;  %2124 = vmatprep.subr.bf16.mxu1 %v2680_v48 }
 0x4a7   : > { %2125 = vmatpush3.bf16.msra.mxu1 %v2319_v13 }
 0x4a8   : > { %1323 = vperm.xlu0 %2242, %v1277_v30   ;;  %2126 = vmatprep.subr.bf16.mxu1 %v2680_v48 }
 0x4ab   : > { %2127 = vmatpush3.bf16.msra.mxu1 %v2323_v17 }
 0x4ac   : > { %2132 = vmatprep.subr.bf16.mxu1 %v2680_v48 }
 0x50b   : > { %v1289_v18 = vpop.permute.xlu0 %1288 }
 0x50c   : > { %v1326_v28 = vmul.f32 %v1289_v18, %v1278_v26 }
 0x50e   : > { %v1334_v36 = vrot.slane %v1326_v28, 4 }
 0x50f   : > { %v1294_v40 = vpop.permute.xlu0 %1293 }
 0x510   : > { %v1327_v27 = vmul.f32 %v1294_v40, %v1279_v22  ;;  %v1335_v49 = vadd.f32 %v1334_v36, %v1326_v28 }
 0x512   : > { %v1340_v33 = vrot.slane %v1327_v27, 4  ;;  %v1336_v53 = vrot.slane %v1335_v49, 2 }
 0x513   : > { %v1299_v32 = vpop.permute.xlu0 %1298 }
 0x514   : > { %v1328_v34 = vmul.f32 %v1299_v32, %v1280_v29  ;;  %v1341_v42 = vadd.f32 %v1340_v33, %v1327_v27  ;;  %v1337_v58 = vadd.f32 %v1336_v53, %v1335_v49 }
 0x516   : > { %v1346_v38 = vrot.slane %v1328_v34, 4  ;;  %v1342_v44 = vrot.slane %v1341_v42, 2  ;;  %v1338_v63 = vrot.slane %v1337_v58, 1 }
 0x517   : > { %v1304_v41 = vpop.permute.xlu0 %1303 }
 0x518   : > { %v1329_v45 = vmul.f32 %v1304_v41, %v1281_v37  ;;  %v1347_v35 = vadd.f32 %v1346_v38, %v1328_v34  ;;  %v1343_v56 = vadd.f32 %v1342_v44, %v1341_v42  ;;  %v1339_v18 = vadd.f32 %v1338_v63, %v1337_v58  ;;  %v2328_v63 = vld [vmem:[#allocation12 + $0x18] ss:$12 sps:$4 sm:$0xff]  }
 0x51a   : > { %v1352_v50 = vrot.slane %v1329_v45, 4  ;;  %v1348_v46 = vrot.slane %v1347_v35, 2  ;;  %v1344_v43 = vrot.slane %v1343_v56, 1  ;;  %v1382_v38 = vpack.c.bf16 %v1339_v18, %v1339_v18 }
 0x51b   : > { %v1309_v39 = vpop.permute.xlu0 %1308 }
 0x51c   : > { %v1353_v52 = vadd.f32 %v1352_v50, %v1329_v45  ;;  %v1330_v15 = vmul.f32 %v1309_v39, %v1282_v51  ;;  %v1349_v30 = vadd.f32 %v1348_v46, %v1347_v35  ;;  %v1345_v13 = vadd.f32 %v1344_v43, %v1343_v56  ;;  %v2327_v43 = vld [vmem:[#allocation12 + $0x8] ss:$12 sps:$4 sm:$0xff]  }
 0x51e   : > { %v1354_v55 = vrot.slane %v1353_v52, 2  ;;  %v1358_v47 = vrot.slane %v1330_v15, 4  ;;  %v1350_v0 = vrot.slane %v1349_v30, 1  ;;  %v1383_v32 = vpack.c.bf16 %v1345_v13, %v1345_v13 }
 0x51f   : > { %v1314_v23 = vpop.permute.xlu0 %1313 }
 0x520   : > { %v1331_v57 = vmul.f32 %v1314_v23, %v1283_v54  ;;  %v1359_v59 = vadd.f32 %v1358_v47, %v1330_v15  ;;  %v1355_v20 = vadd.f32 %v1354_v55, %v1353_v52  ;;  %v1351_v22 = vadd.f32 %v1350_v0, %v1349_v30  ;;  %v2331_v0 = vld [vmem:[#allocation12 + $0x20] ss:$12 sps:$4 sm:$0xff]  }
 0x521   : > { %v1439_v35 = vunpack.c.l.b16 %v1383_v32  ;;  %v1438_v52 = vunpack.c.l.b16 %v1382_v38 }
 0x522   : > { %v1364_v21 = vrot.slane %v1331_v57, 4  ;;  %v1360_v3 = vrot.slane %v1359_v59, 2  ;;  %v1356_v7 = vrot.slane %v1355_v20, 1  ;;  %v1384_v37 = vpack.c.bf16 %v1351_v22, %v1351_v22 }
 0x523   : > { %v1319_v61 = vpop.permute.xlu0 %1318  ;;  %v1446_v55 = vsel %vm1069_vm0, %v1439_v35, %v1438_v52 }
 0x524   : > { %v1365_v19 = vadd.f32 %v1364_v21, %v1331_v57  ;;  %v1332_v62 = vmul.f32 %v1319_v61, %v1284_v60  ;;  %v1361_v2 = vadd.f32 %v1360_v3, %v1359_v59  ;;  %v1357_v26 = vadd.f32 %v1356_v7, %v1355_v20  ;;  %v2324_v3 = vld [vmem:[#allocation12] ss:$12 sps:$4 sm:$0xff]   ;;  %v857_v7 = vpop.f32.mrb[0].mxu1 }
 0x525   : > { %v1440_v44 = vunpack.c.l.b16 %v1384_v37 }
 0x526   : > { %v1366_v8 = vrot.slane %v1365_v19, 2  ;;  %v1370_v9 = vrot.slane %v1332_v62, 4  ;;  %v1362_v11 = vrot.slane %v1361_v2, 1  ;;  %v1385_v41 = vpack.c.bf16 %v1357_v26, %v1357_v26 }
 0x527   : > { %v1324_v12 = vpop.permute.xlu0 %1323  ;;  %v1447_v56 = vsel %vm1071_vm1, %v1440_v44, %v1446_v55  ;;  %v609_v26 = vrot.slane %v3118_v25, %v3175_v4 }
 0x528   : > { %v1367_v14 = vadd.f32 %v1366_v8, %v1365_v19  ;;  %v1371_v16 = vadd.f32 %v1370_v9, %v1332_v62  ;;  %v1333_v17 = vmul.f32 %v1324_v12, %v1285_v6  ;;  %v1363_v29 = vadd.f32 %v1362_v11, %v1361_v2  ;;  %v2330_v62 = vld [vmem:[#allocation12 + $0x1c] ss:$12 sps:$4 sm:$0xff]   ;;  %v859_v8 = vpop.f32.mrb[1].mxu1 }
 0x529   : > { %v1441_v53 = vunpack.c.l.b16 %v1385_v41  ;;  %v566_v2 = vld [vmem:[%s468_s15] sm:$0xff]  ;;  %v861_v9 = vpop.f32.mrb[2].mxu1 }
 0x52a   : > { %v1368_v40 = vrot.slane %v1367_v14, 1  ;;  %v1372_v27 = vrot.slane %v1371_v16, 2  ;;  %v1376_v28 = vrot.slane %v1333_v17, 4  ;;  %v1386_v49 = vpack.c.bf16 %v1363_v29, %v1363_v29  ;;  %v862_v11 = vpop.f32.mrb[3].mxu1 }
 0x52b   : > { %v1448_v58 = vsel %vm1073_vm2, %v1441_v53, %v1447_v56  ;;  %v567_v6 = vpack.c.bf16 %v566_v2, %v566_v2 }
 0x52c   : > { %v1369_v33 = vadd.f32 %v1368_v40, %v1367_v14  ;;  %v1373_v34 = vadd.f32 %v1372_v27, %v1371_v16  ;;  %v1377_v36 = vadd.f32 %v1376_v28, %v1333_v17  ;;  %v1442_v54 = vunpack.c.l.b16 %v1386_v49 }
 0x52d   : > { %v613_v27 = vrot.slane %v3118_v25, %v3178_v5 }
 0x52e   : > { %v1374_v42 = vrot.slane %v1373_v34, 1  ;;  %v1378_v45 = vrot.slane %v1377_v36, 2  ;;  %v1387_v50 = vpack.c.bf16 %v1369_v33, %v1369_v33  ;;  %v1449_v59 = vsel %vm1075_vm3, %v1442_v54, %v1448_v58 }
 0x530   : > { %v1375_v51 = vadd.f32 %v1374_v42, %v1373_v34  ;;  %v1379_v39 = vadd.f32 %v1378_v45, %v1377_v36  ;;  %v1443_v47 = vunpack.c.l.b16 %v1387_v50  ;;  %v819_v45 = vadd.f32 %v3123_v31, %v609_v26 }
 0x531   : > { %v617_v31 = vrot.slane %v3118_v25, %v3185_v10 }
 0x532   : > { %v1388_v46 = vpack.c.bf16 %v1375_v51, %v1375_v51  ;;  %v1380_v15 = vrot.slane %v1379_v39, 1  ;;  %v1450_v60 = vsel %vm1077_vm4, %v1443_v47, %v1449_v59 }
 0x533   : > { %v860_v47 = vadd.f32 %v859_v8, %v617_v31 }
 0x534   : > { %v1381_v23 = vadd.f32 %v1380_v15, %v1379_v39  ;;  %v1444_v57 = vunpack.c.l.b16 %v1388_v46 }
 0x536   : > { %v1389_v30 = vpack.c.bf16 %v1381_v23, %v1381_v23  ;;  %v1451_v21 = vsel %vm1079_vm5, %v1444_v57, %v1450_v60 }
 0x538   : > { %v1445_v20 = vunpack.c.l.b16 %v1389_v30 }
 0x53a   : > { %v1452_v61 = vsel %vm1081_vm6, %v1445_v20, %v1451_v21 }
 0x53b   : > { %v1453_v19 = vpack.c.b16 %v1452_v61, %v1452_v61 }
 0x53d   : > { %1616 = vmatmul.mubr.bf16.vlgmr.msra.gmra.mrb[4].mxu0 %v1453_v19  ;;  %2129 = vmatmul.mubr.bf16.vlgmr.msra.gmra.mrb[4].mxu1 %v1453_v19 }
 0x53e   : > { %1701 = vmatpush1.bf16.msra.mxu0 %v2324_v3  ;;  %2133 = vmatpush3.bf16.msra.mxu1 %v2327_v43 }
 0x53f   : > { %1702 = vmatprep.subr.bf16.mxu0 %v2330_v62  ;;  %2134 = vmatprep.subr.bf16.mxu1 %v2680_v48 }
 0x540   : > { %1732 = vmatprep.mubr.bf16.mxu0 %v2678_v1  ;;  %2136 = vmatprep.mubr.msk.bf16.mxu1 %vm2681_vm8, %v2680_v48  ;;  %v1781_v48 = vld [vmem:[%s3433_s23] sm:$0x7] }
 0x541   : > { %v1786_v40 = vrot.slane %v1781_v48, %v3113_v24  ;;  %v1790_v32 = vrot.slane %v1781_v48, %v3175_v4  ;;  %v858_v24 = vadd.f32 %v857_v7, %v613_v27  ;;  %v1794_v54 = vrot.slane %v1781_v48, %v3178_v5  ;;  %v2376_v5 = vld [vmem:[%s477_s12] sm:$0xff]  ;;  %s2585_s12 = sshll.u32 %s2682_s30, 4  ;;  %s2586_s12 = int_to_ptr.vmem [resolvable:$false] %s2585_s12 }
 0x542   : > { %1703 = vmatpush1.bf16.msra.mxu0 %v2328_v63  ;;  %2135 = vmatpush3.bf16.msra.mxu1 %v2331_v0  ;;  %s2587_s16 = scalar_lea.vmem %s2586_s12, 256  ;;  %p2588_p7 = scmp.lt.s32.totalorder %s3316_s6, %s2586_s12 }
 0x543   : > { %p2589_p6 = scmp.lt.s32.totalorder %s2587_s16, %s2581_s7 }
 0x545   : > { %2090 = vmatmul.mubr.msk.bf16.vlgmr.msra.gmra.mrb[8].mxu0 %vm1696_vm9, %v567_v6  ;;  %2137 = vmatmul.mubr.msk.bf16.vlgmr.msra.gmra.mrb[8].mxu1 %vm1696_vm9, %v567_v6  ;;  %p2590_p5 = por %p2589_p6, %p2588_p7 }
 0x547   : > { %p2591_p4 = pnand %p2590_p5, %p2584_p2 }
 0x610   : > { %v1617_v12 = vpop.f32.mrb[4].mxu0  ;;  %v1658_v13 = vpop.f32.mrb[4].mxu1 }
 0x611   : > { %v1619_v14 = vpop.f32.mrb[5].mxu0  ;;  %v2130_v16 = vpop.f32.mrb[5].mxu1 }
 0x612   : > { %v1621_v17 = vpop.f32.mrb[6].mxu0  ;;  %v1661_v18 = vpop.f32.mrb[6].mxu1 }
 0x613   : > { %v1622_v1 = vpop.f32.mrb[7].mxu0  ;;  %v2131_v22 = vpop.f32.mrb[7].mxu1 }
 0x618   : > { %v1734_v28 = vpop.f32.mrb[8].mxu0  ;;  %v1775_v29 = vpop.f32.mrb[8].mxu1 }
 0x619   : > { %v1735_v33 = vadd.f32 %v1734_v28, %v1617_v12  ;;  %v1776_v34 = vadd.f32 %v1775_v29, %v1658_v13  ;;  %v1736_v36 = vpop.f32.mrb[9].mxu0  ;;  %v2138_v37 = vpop.f32.mrb[9].mxu1 }
 0x61a   : > { %v1737_v38 = vadd.f32 %v1736_v36, %v1619_v14  ;;  %v1738_v41 = vpop.f32.mrb[10].mxu0  ;;  %v1778_v42 = vpop.f32.mrb[10].mxu1 }
 0x61b   : > { %v1798_v49 = vadd.f32 %v1786_v40, %v1735_v33  ;;  %v1739_v35 = vpop.f32.mrb[11].mxu0  ;;  %v2139_v50 = vpop.f32.mrb[11].mxu1  ;;  %v1800_v56 = vadd.f32 %v1794_v54, %v1776_v34 }
 0x61c   : > { %v1799_v51 = vadd.f32 %v1790_v32, %v1737_v38 }
 0x61d   : > { %v1801_v39 = vadd.f32 %v1798_v49, %v819_v45 }
 0x61e   : > { %v1808_v44 = vadd.f32 %v1799_v51, %v858_v24 }
 0x61f   : > { %v2092_v52 = vmul.f32 -1.442695, %v1801_v39 }
 0x620   : > { %v2093_v53 = vmul.f32 -1.442695, %v1808_v44 }
 0x621   : > { %2366 = vpow2.f32 %v2092_v52 }
 0x622   : > { %2368 = vpow2.f32 %v2093_v53 }
 0x62b   : > { %v2367_v4 = vpop.eup %2366 }
 0x62c   : > { %v1805_v46 = vadd.f32 1.0, %v2367_v4  ;;  %v2369_v15 = vpop.eup %2368 }
 0x62d   : > { %v1812_v55 = vadd.f32 1.0, %v2369_v15 }
 0x62e   : > { %2370 = vrcp.f32 %v1805_v46 }
 0x62f   : > { %2372 = vrcp.f32 %v1812_v55 }
 0x638   : > { %v2371_v23 = vpop.eup %2370 }
 0x639   : > { %v1815_v57 = vmul.f32 %v2371_v23, %v860_v47  ;;  %v2373_v30 = vpop.eup %2372 }
 0x63a   : > { %v1818_v59 = vsub.f32 1.0, %v2373_v30  ;;  %v1820_v10 = vmul.f32 %v2376_v5, %v2373_v30 }
 0x63b   : > { %v1816_v58 = vadd.f32 %v1815_v57, %v1800_v56 }
 0x63d   : > { %2374 = vtanh.f32 %v1816_v58 }
 0x647   : > { %v2375_v60 = vpop.eup %2374 }
 0x648   : > { %v1819_v25 = vmul.f32 %v2375_v60, %v1818_v59 }
 0x64a   : > { %v1821_v20 = vadd.f32 %v1820_v10, %v1819_v25 }
 0x64c   : > { %1822 = vst [vmem:[%s560_s4] sm:$0xff] %v1821_v20 }
 0x64d   : > { %2594 = shalt.err (!%p2591_p4)
}
 0x64e   : > { %s2595_s13 = scalar_lea.hbm %s3314_s25, 128  ;;  %s2599_s24 = scalar_lea.hbm %s3435_s26, 256 }
 0x64f   : > { %p2596_p1 = scmp.ne.s32.totalorder %s3314_s25, %s2595_s13  ;;  %p2600_p0 = scmp.lt.u32.totalorder %s3314_s25, %s3435_s26 }
 0x650   : > { %p2601_p8 = scmp.lt.u32.totalorder %s2599_s24, %s2595_s13  ;;  %p2603_p9 = scmp.lt.u32.totalorder %s2595_s13, %s3314_s25 }
 0x651   : > { %p2597_p3 = pnand %p2596_p1, %p3436_p10 }
 0x652   : > { %p2602_p13 = por %p2601_p8, %p2600_p0 }
 0x653   : > { %p2598_p11 = pneg %p2597_p3 }
 0x654   : > { %p2604_p12 = por %p2603_p9, %p2602_p13 }
 0x656   : > { %p2605_p2 = pnand %p2604_p12, %p2598_p11 }
 0x658   : > { %2608 = shalt.err (!%p2605_p2)
}
 0x659   : > { %2160 = dma.vmem_to_hbm [thread:$0]  (%p3436_p10), %s3316_s6, 128, %s3314_s25, %s1824_s29  }
 0x65a PF: > { %s3437_s18 = sld [smem:[#allocation22_spill]]  ;;  %s3438_s8 = sld [smem:[#allocation24_spill]] }
 0x65b   : > { %p3440_p6 = scmp.ge.s32.totalorder %s2663_s22, 2 }
 0x660   : > { %s1849_s19 = sand.u32 1, %s3437_s18   ;;  %p3439_p7 = scmp.ne.s32.totalorder %s3438_s8, 0 }
 0x661   : > { %s1850_s1 = scalar_lea.sflag [#allocation5], %s1849_s19 }
 0x662   : > { %p2186_p5 = pnand %p3440_p6, %p3439_p7 }
 0x664   : > { %2646 = dma.done.wait (!%p2186_p5), %s1850_s1, 128  }
 0x665   : > { %2648 = vsyncadd (!%p2186_p5), %s1850_s1, 4294967168  ;;  %s3441_s22 = sld [smem:[#allocation25_spill]]  ;;  %s3442_s23 = sld [smem:[#allocation23_spill]] }
 0x666   : > { %s3443_s21 = sld [smem:[#allocation26_spill]]  ;;  %s3444_s19 = smov %s2655_s20 }
 0x66b   : > { %p33_p4 = scmp.ge.s32.totalorder %s3441_s22, 4   ;;  %s3445_s20 = smov %s3442_s23 }
 0x66d   :  { %35 = sbr.rel (!%p33_p4) target bundleno = 17 (0x11), region = 158 }
 0x674   :  { %1855 = vsyncpa [#allocation4], 1 }
 0x675   :  { %1857 = vsyncpa [#allocation4 + $0x1], 1 }
 0x676   :  { %1858 = vsyncpa [#allocation7], 1 }
 0x677   :  { %1860 = vsyncpa [#allocation7 + $0x1], 1 }
 0x678   :  { %1861 = vsyncpa [#allocation10], 1 }
 0x679   :  { %1863 = vsyncpa [#allocation10 + $0x1], 1 }
 0x67a   :  { %1864 = vsyncpa [#allocation13], 1 }
 0x67b   :  { %1865 = vsyncpa [#allocation5], 1 }
 0x67c   :  { %1867 = vsyncpa [#allocation5 + $0x1], 1 }

</bundles_post_ra>
